<compile_context>
chip_gen: v7x
topology: tpu7x:2x2x1
jax: 0.10.0
libtpu: 0.0.40
codegen_flags: <defaults>
</compile_context>

<pallas_src>
import math

import jax
import jax.numpy as jnp
from jax.experimental import pallas as pl
from jax.experimental.pallas import tpu as pltpu

# ----------------------------- model hyper-params -----------------------------
D_MODEL = 32
D_FF = 64
HEADS = 4
D_K = D_MODEL // HEADS
LN_EPS = 1e-5
DROPOUT_RATE = 0.1  # identity at inference; kept for interface fidelity


# --------------------------------- the kernel ---------------------------------
def decoder_layer_kernel(
    tgt_ref, src_ref, mask_self_ref, mask_st_ref,
    # self attention params (packed)
    sa_wqkv, sa_wo, sa_bo,
    # cross attention params (packed)
    ca_wq, ca_wkv, ca_wo, ca_bo,
    # ffn params
    ffn_w1, ffn_b1, ffn_w2, ffn_b2,
    # layer norms
    ln1_g, ln1_b, ln2_g, ln2_b, ln3_g, ln3_b,
    # output
    out_ref,
):
    f32 = jnp.float32
    B, S, D = tgt_ref.shape
    _, T, _ = src_ref.shape
    H, dk = HEADS, D_K
    HD = H * dk
    scale = 1.0 / math.sqrt(dk)

    # ---- load everything once (whole batch, whole params) ----
    tgt = tgt_ref[...].astype(f32).reshape(B * S, D)     # (B*S, D)
    src = src_ref[...].astype(f32).reshape(B * T, D)     # (B*T, D)

    # mask -> additive bias, computed once per attention block (not per head)
    bias_self = jnp.where(mask_self_ref[...] == 0.0, f32(-1e9), f32(0.0))  # (B,S,S)
    bias_cross = jnp.where(mask_st_ref[...] == 0.0, f32(-1e9), f32(0.0))   # (B,S,T)

    w_qkv_s = sa_wqkv[...]          # (D, 3*HD)
    wo_s = sa_wo[...]               # (HD, D)
    bo_s = sa_bo[...]               # (1, D)
    w_q_c = ca_wq[...]              # (D, HD)
    w_kv_c = ca_wkv[...]            # (D, 2*HD)
    wo_c = ca_wo[...]               # (HD, D)
    bo_c = ca_bo[...]               # (1, D)
    w1 = ffn_w1[...]                # (D, D_FF)
    b1 = ffn_b1[...]                # (1, D_FF)
    w2 = ffn_w2[...]                # (D_FF, D)
    b2 = ffn_b2[...]                # (1, D)
    g1, be1 = ln1_g[...], ln1_b[...]
    g2, be2 = ln2_g[...], ln2_b[...]
    g3, be3 = ln3_g[...], ln3_b[...]

    def layer_norm(x, g, b):
        # single pass: var = E[x^2] - mean^2
        mean = jnp.mean(x, axis=-1, keepdims=True)
        mean_sq = jnp.mean(x * x, axis=-1, keepdims=True)
        var = mean_sq - mean * mean
        return (x - mean) * jax.lax.rsqrt(var + LN_EPS) * g + b

    def softmax(s):
        m = jnp.max(s, axis=-1, keepdims=True)
        e = jnp.exp(s - m)
        return e * pl.reciprocal(jnp.sum(e, axis=-1, keepdims=True), approx=True)

    def attention(q3, k3, v3, bias, wo, bo, n_q, n_kv):
        # q3: (B, n_q, HD), k3/v3: (B, n_kv, HD), bias: (B, n_q, n_kv)
        out = bo  # (1, D) -> broadcasts up on first accumulation
        for h in range(H):  # static unroll over heads
            sl = slice(h * dk, (h + 1) * dk)
            qh = q3[:, :, sl]                                       # (B, n_q, dk)
            kh = k3[:, :, sl]                                       # (B, n_kv, dk)
            vh = v3[:, :, sl]                                       # (B, n_kv, dk)
            s = jnp.einsum("bqd,bkd->bqk", qh, kh,
                           preferred_element_type=f32) * scale + bias
            p = softmax(s)
            oh = jnp.einsum("bqk,bkd->bqd", p, vh,
                            preferred_element_type=f32)             # (B, n_q, dk)
            # fold head output through its Wo block (avoids head concat)
            out = out + jnp.dot(oh.reshape(B * n_q, dk), wo[sl, :],
                                preferred_element_type=f32)
        return out  # (B*n_q, D)

    # ---- self attention block + residual + LN ----
    qkv = jnp.dot(tgt, w_qkv_s, preferred_element_type=f32).reshape(B, S, 3 * HD)
    sa = attention(qkv[:, :, 0:HD], qkv[:, :, HD:2 * HD], qkv[:, :, 2 * HD:3 * HD],
                   bias_self, wo_s, bo_s, S, S)
    # dropout_self_attention: identity (inference)
    x = layer_norm(tgt + sa, g1, be1)

    # ---- src-tgt (cross) attention block + residual + LN ----
    q = jnp.dot(x, w_q_c, preferred_element_type=f32).reshape(B, S, HD)
    kv = jnp.dot(src, w_kv_c, preferred_element_type=f32).reshape(B, T, 2 * HD)
    ca = attention(q, kv[:, :, 0:HD], kv[:, :, HD:2 * HD],
                   bias_cross, wo_c, bo_c, S, T)
    # dropout_src_tgt_attention: identity (inference)
    x = layer_norm(x + ca, g2, be2)

    # ---- FFN block + residual + LN ----
    hidden = jnp.maximum(jnp.dot(x, w1, preferred_element_type=f32) + b1, 0.0)
    ffn = jnp.dot(hidden, w2, preferred_element_type=f32) + b2
    # dropout_ffn: identity (inference)
    x = layer_norm(x + ffn, g3, be3)

    out_ref[...] = x.astype(out_ref.dtype)   # flat (B*S, D) store


# ------------------------------- python wrapper --------------------------------
def transformer_decoder_layer(tgt, src, mask_src_tgt, mask_self, params):
    B, S, D = tgt.shape
    _, T, _ = src.shape
    HD = HEADS * D_K

    def pack_heads(w):  # (H, D, dk) -> (D, H*dk), head blocks along lanes
        return jnp.transpose(w, (1, 0, 2)).reshape(D, HD)

    # fuse per-head projections into single matmul weights
    w_qkv_self = jnp.concatenate(
        [pack_heads(params["sa_wq"]), pack_heads(params["sa_wk"]),
         pack_heads(params["sa_wv"])], axis=1)                       # (D, 3*HD)
    w_q_cross = pack_heads(params["ca_wq"])                          # (D, HD)
    w_kv_cross = jnp.concatenate(
        [pack_heads(params["ca_wk"]), pack_heads(params["ca_wv"])], axis=1)  # (D, 2*HD)

    inputs = [
        tgt, src, mask_self, mask_src_tgt,
        w_qkv_self, params["sa_wo"], params["sa_bo"],
        w_q_cross, w_kv_cross, params["ca_wo"], params["ca_bo"],
        params["ffn_w1"], params["ffn_b1"], params["ffn_w2"], params["ffn_b2"],
        params["ln1_g"], params["ln1_b"],
        params["ln2_g"], params["ln2_b"],
        params["ln3_g"], params["ln3_b"],
    ]

    vmem = pltpu.MemorySpace.VMEM
    # single invocation: no grid, whole arrays resident in VMEM
    out_flat = pl.pallas_call(
        decoder_layer_kernel,
        out_shape=jax.ShapeDtypeStruct((B * S, D), tgt.dtype),
        in_specs=[pl.BlockSpec(memory_space=vmem) for _ in inputs],
        out_specs=pl.BlockSpec(memory_space=vmem),
    )(*inputs)
    # TODO(synk): on v7x a size>=2 "parallel" grid axis could split work across the
    # two TensorCores; at B=2, S=8 the grid overhead outweighs that, so omitted.
    return out_flat.reshape(B, S, D)


# ----------------------------- deterministic params ----------------------------
def init_params(key):
    ks = jax.random.split(key, 16)
    std = 0.02

    def rnd(k, shape):
        return (std * jax.random.normal(k, shape)).astype(jnp.float32)

    params = {
        # self attention
        "sa_wq": rnd(ks[0], (HEADS, D_MODEL, D_K)),
        "sa_wk": rnd(ks[1], (HEADS, D_MODEL, D_K)),
        "sa_wv": rnd(ks[2], (HEADS, D_MODEL, D_K)),
        "sa_wo": rnd(ks[3], (HEADS * D_K, D_MODEL)),
        "sa_bo": rnd(ks[4], (1, D_MODEL)),
        # cross attention
        "ca_wq": rnd(ks[5], (HEADS, D_MODEL, D_K)),
        "ca_wk": rnd(ks[6], (HEADS, D_MODEL, D_K)),
        "ca_wv": rnd(ks[7], (HEADS, D_MODEL, D_K)),
        "ca_wo": rnd(ks[8], (HEADS * D_K, D_MODEL)),
        "ca_bo": rnd(ks[9], (1, D_MODEL)),
        # ffn
        "ffn_w1": rnd(ks[10], (D_MODEL, D_FF)),
        "ffn_b1": rnd(ks[11], (1, D_FF)),
        "ffn_w2": rnd(ks[12], (D_FF, D_MODEL)),
        "ffn_b2": rnd(ks[13], (1, D_MODEL)),
        # layer norms (gamma=1, beta=0, torch.nn.LayerNorm default init)
        "ln1_g": jnp.ones((1, D_MODEL), jnp.float32),
        "ln1_b": jnp.zeros((1, D_MODEL), jnp.float32),
        "ln2_g": jnp.ones((1, D_MODEL), jnp.float32),
        "ln2_b": jnp.zeros((1, D_MODEL), jnp.float32),
        "ln3_g": jnp.ones((1, D_MODEL), jnp.float32),
        "ln3_b": jnp.zeros((1, D_MODEL), jnp.float32),
    }
    return params


# ------------------------------------ main -------------------------------------
if __name__ == "__main__":
    key = jax.random.PRNGKey(0)
    k_tgt, k_src, k_par = jax.random.split(key, 3)

    B, S_TGT, S_SRC = 2, 8, 8
    tgt = jax.random.normal(k_tgt, (B, S_TGT, D_MODEL), dtype=jnp.float32)
    src = jax.random.normal(k_src, (B, S_SRC, D_MODEL), dtype=jnp.float32)

    # self-attention mask: causal; src-tgt mask: all visible.  mask==0 => masked.
    mask_self = jnp.broadcast_to(
        jnp.tril(jnp.ones((S_TGT, S_TGT), jnp.float32)), (B, S_TGT, S_TGT)
    )
    mask_src_tgt = jnp.ones((B, S_TGT, S_SRC), jnp.float32)

    params = init_params(k_par)

    run = jax.jit(transformer_decoder_layer)
    out = run(tgt, src, mask_src_tgt, mask_self, params)
    out = jax.block_until_ready(out)
    assert out.shape == (B, S_TGT, D_MODEL)
    assert bool(jnp.all(jnp.isfinite(out)))
    print("KERNEL_OK")
</pallas_src>

<mosaic_0001>
module attributes {stable_mosaic.version = 11 : i64} {
  func.func @decoder_layer_kernel(%arg0: memref<2x8x32xf32, #tpu.memory_space<vmem>>, %arg1: memref<2x8x32xf32, #tpu.memory_space<vmem>>, %arg2: memref<2x8x8xf32, #tpu.memory_space<vmem>>, %arg3: memref<2x8x8xf32, #tpu.memory_space<vmem>>, %arg4: memref<32x96xf32, #tpu.memory_space<vmem>>, %arg5: memref<32x32xf32, #tpu.memory_space<vmem>>, %arg6: memref<1x32xf32, #tpu.memory_space<vmem>>, %arg7: memref<32x32xf32, #tpu.memory_space<vmem>>, %arg8: memref<32x64xf32, #tpu.memory_space<vmem>>, %arg9: memref<32x32xf32, #tpu.memory_space<vmem>>, %arg10: memref<1x32xf32, #tpu.memory_space<vmem>>, %arg11: memref<32x64xf32, #tpu.memory_space<vmem>>, %arg12: memref<1x64xf32, #tpu.memory_space<vmem>>, %arg13: memref<64x32xf32, #tpu.memory_space<vmem>>, %arg14: memref<1x32xf32, #tpu.memory_space<vmem>>, %arg15: memref<1x32xf32, #tpu.memory_space<vmem>>, %arg16: memref<1x32xf32, #tpu.memory_space<vmem>>, %arg17: memref<1x32xf32, #tpu.memory_space<vmem>>, %arg18: memref<1x32xf32, #tpu.memory_space<vmem>>, %arg19: memref<1x32xf32, #tpu.memory_space<vmem>>, %arg20: memref<1x32xf32, #tpu.memory_space<vmem>>, %arg21: memref<16x32xf32, #tpu.memory_space<vmem>>) attributes {dimension_semantics = [], scalar_prefetch = 0 : i64, scratch_operands = 0 : i64, tpu.core_type = #tpu.core_type<tc>} {
    %c0 = arith.constant 0 : index
    %c0_0 = arith.constant 0 : index
    %c0_1 = arith.constant 0 : index
    %0 = vector.load %arg0[%c0, %c0_0, %c0_1] : memref<2x8x32xf32, #tpu.memory_space<vmem>>, vector<2x8x32xf32>
    %1 = vector.shape_cast %0 : vector<2x8x32xf32> to vector<16x32xf32>
    %c0_2 = arith.constant 0 : index
    %c0_3 = arith.constant 0 : index
    %c0_4 = arith.constant 0 : index
    %2 = vector.load %arg1[%c0_2, %c0_3, %c0_4] : memref<2x8x32xf32, #tpu.memory_space<vmem>>, vector<2x8x32xf32>
    %3 = vector.shape_cast %2 : vector<2x8x32xf32> to vector<16x32xf32>
    %c0_5 = arith.constant 0 : index
    %c0_6 = arith.constant 0 : index
    %c0_7 = arith.constant 0 : index
    %4 = vector.load %arg2[%c0_5, %c0_6, %c0_7] : memref<2x8x8xf32, #tpu.memory_space<vmem>>, vector<2x8x8xf32>
    %cst = arith.constant 0.000000e+00 : f32
    %5 = vector.broadcast %cst : f32 to vector<2x8x8xf32>
    %6 = arith.cmpf oeq, %4, %5 : vector<2x8x8xf32>
    %cst_8 = arith.constant -1.000000e+09 : f32
    %cst_9 = arith.constant 0.000000e+00 : f32
    %7 = vector.broadcast %cst_8 : f32 to vector<2x8x8xf32>
    %8 = vector.broadcast %cst_9 : f32 to vector<2x8x8xf32>
    %9 = arith.select %6, %7, %8 : vector<2x8x8xi1>, vector<2x8x8xf32>
    %c0_10 = arith.constant 0 : index
    %c0_11 = arith.constant 0 : index
    %c0_12 = arith.constant 0 : index
    %10 = vector.load %arg3[%c0_10, %c0_11, %c0_12] : memref<2x8x8xf32, #tpu.memory_space<vmem>>, vector<2x8x8xf32>
    %cst_13 = arith.constant 0.000000e+00 : f32
    %11 = vector.broadcast %cst_13 : f32 to vector<2x8x8xf32>
    %12 = arith.cmpf oeq, %10, %11 : vector<2x8x8xf32>
    %cst_14 = arith.constant -1.000000e+09 : f32
    %cst_15 = arith.constant 0.000000e+00 : f32
    %13 = vector.broadcast %cst_14 : f32 to vector<2x8x8xf32>
    %14 = vector.broadcast %cst_15 : f32 to vector<2x8x8xf32>
    %15 = arith.select %12, %13, %14 : vector<2x8x8xi1>, vector<2x8x8xf32>
    %c0_16 = arith.constant 0 : index
    %c0_17 = arith.constant 0 : index
    %16 = vector.load %arg4[%c0_16, %c0_17] : memref<32x96xf32, #tpu.memory_space<vmem>>, vector<32x96xf32>
    %c0_18 = arith.constant 0 : index
    %c0_19 = arith.constant 0 : index
    %17 = vector.load %arg5[%c0_18, %c0_19] : memref<32x32xf32, #tpu.memory_space<vmem>>, vector<32x32xf32>
    %c0_20 = arith.constant 0 : index
    %c0_21 = arith.constant 0 : index
    %18 = vector.load %arg6[%c0_20, %c0_21] : memref<1x32xf32, #tpu.memory_space<vmem>>, vector<1x32xf32>
    %c0_22 = arith.constant 0 : index
    %c0_23 = arith.constant 0 : index
    %19 = vector.load %arg7[%c0_22, %c0_23] : memref<32x32xf32, #tpu.memory_space<vmem>>, vector<32x32xf32>
    %c0_24 = arith.constant 0 : index
    %c0_25 = arith.constant 0 : index
    %20 = vector.load %arg8[%c0_24, %c0_25] : memref<32x64xf32, #tpu.memory_space<vmem>>, vector<32x64xf32>
    %c0_26 = arith.constant 0 : index
    %c0_27 = arith.constant 0 : index
    %21 = vector.load %arg9[%c0_26, %c0_27] : memref<32x32xf32, #tpu.memory_space<vmem>>, vector<32x32xf32>
    %c0_28 = arith.constant 0 : index
    %c0_29 = arith.constant 0 : index
    %22 = vector.load %arg10[%c0_28, %c0_29] : memref<1x32xf32, #tpu.memory_space<vmem>>, vector<1x32xf32>
    %c0_30 = arith.constant 0 : index
    %c0_31 = arith.constant 0 : index
    %23 = vector.load %arg11[%c0_30, %c0_31] : memref<32x64xf32, #tpu.memory_space<vmem>>, vector<32x64xf32>
    %c0_32 = arith.constant 0 : index
    %c0_33 = arith.constant 0 : index
    %24 = vector.load %arg12[%c0_32, %c0_33] : memref<1x64xf32, #tpu.memory_space<vmem>>, vector<1x64xf32>
    %c0_34 = arith.constant 0 : index
    %c0_35 = arith.constant 0 : index
    %25 = vector.load %arg13[%c0_34, %c0_35] : memref<64x32xf32, #tpu.memory_space<vmem>>, vector<64x32xf32>
    %c0_36 = arith.constant 0 : index
    %c0_37 = arith.constant 0 : index
    %26 = vector.load %arg14[%c0_36, %c0_37] : memref<1x32xf32, #tpu.memory_space<vmem>>, vector<1x32xf32>
    %c0_38 = arith.constant 0 : index
    %c0_39 = arith.constant 0 : index
    %27 = vector.load %arg15[%c0_38, %c0_39] : memref<1x32xf32, #tpu.memory_space<vmem>>, vector<1x32xf32>
    %c0_40 = arith.constant 0 : index
    %c0_41 = arith.constant 0 : index
    %28 = vector.load %arg16[%c0_40, %c0_41] : memref<1x32xf32, #tpu.memory_space<vmem>>, vector<1x32xf32>
    %c0_42 = arith.constant 0 : index
    %c0_43 = arith.constant 0 : index
    %29 = vector.load %arg17[%c0_42, %c0_43] : memref<1x32xf32, #tpu.memory_space<vmem>>, vector<1x32xf32>
    %c0_44 = arith.constant 0 : index
    %c0_45 = arith.constant 0 : index
    %30 = vector.load %arg18[%c0_44, %c0_45] : memref<1x32xf32, #tpu.memory_space<vmem>>, vector<1x32xf32>
    %c0_46 = arith.constant 0 : index
    %c0_47 = arith.constant 0 : index
    %31 = vector.load %arg19[%c0_46, %c0_47] : memref<1x32xf32, #tpu.memory_space<vmem>>, vector<1x32xf32>
    %c0_48 = arith.constant 0 : index
    %c0_49 = arith.constant 0 : index
    %32 = vector.load %arg20[%c0_48, %c0_49] : memref<1x32xf32, #tpu.memory_space<vmem>>, vector<1x32xf32>
    %cst_50 = arith.constant dense<0.000000e+00> : vector<16x96xf32>
    %33 = tpu.matmul %1, %16, %cst_50 {dimension_numbers = #tpu.dot_dimension_numbers<[1], [0], [0], [1], [0, 0, 1, 1], [], []>} : vector<16x32xf32>, vector<32x96xf32>, vector<16x96xf32> -> vector<16x96xf32>
    %34 = vector.shape_cast %33 : vector<16x96xf32> to vector<2x8x96xf32>
    %35 = vector.extract_strided_slice %34 {offsets = [0, 0, 0], sizes = [2, 8, 32], strides = [1, 1, 1]} : vector<2x8x96xf32> to vector<2x8x32xf32>
    %36 = vector.extract_strided_slice %34 {offsets = [0, 0, 32], sizes = [2, 8, 32], strides = [1, 1, 1]} : vector<2x8x96xf32> to vector<2x8x32xf32>
    %37 = vector.extract_strided_slice %34 {offsets = [0, 0, 64], sizes = [2, 8, 32], strides = [1, 1, 1]} : vector<2x8x96xf32> to vector<2x8x32xf32>
    %38 = vector.extract_strided_slice %35 {offsets = [0, 0, 0], sizes = [2, 8, 8], strides = [1, 1, 1]} : vector<2x8x32xf32> to vector<2x8x8xf32>
    %39 = vector.extract_strided_slice %36 {offsets = [0, 0, 0], sizes = [2, 8, 8], strides = [1, 1, 1]} : vector<2x8x32xf32> to vector<2x8x8xf32>
    %40 = vector.extract_strided_slice %37 {offsets = [0, 0, 0], sizes = [2, 8, 8], strides = [1, 1, 1]} : vector<2x8x32xf32> to vector<2x8x8xf32>
    "tpu.trace_start"() <{level = 10 : i32, message = "bqd,bkd->bqk"}> : () -> ()
    %cst_51 = arith.constant dense<0.000000e+00> : vector<2x8x8xf32>
    %41 = tpu.matmul %38, %39, %cst_51 {dimension_numbers = #tpu.dot_dimension_numbers<[2], [2], [1], [1], [0, 0, 0, 1, 1, 1], [0], [0]>} : vector<2x8x8xf32>, vector<2x8x8xf32>, vector<2x8x8xf32> -> vector<2x8x8xf32>
    "tpu.trace_stop"() : () -> ()
    %cst_52 = arith.constant 0.353553385 : f32
    %42 = vector.broadcast %cst_52 : f32 to vector<2x8x8xf32>
    %43 = arith.mulf %41, %42 : vector<2x8x8xf32>
    %44 = arith.addf %43, %9 : vector<2x8x8xf32>
    %cst_53 = arith.constant dense<0xFF800000> : vector<2x8xf32>
    %45 = vector.multi_reduction <maximumf>, %44, %cst_53 [2] : vector<2x8x8xf32> to vector<2x8xf32>
    %46 = vector.shape_cast %45 : vector<2x8xf32> to vector<2x8x1xf32>
    %47 = vector.broadcast %46 : vector<2x8x1xf32> to vector<2x8x8xf32>
    %48 = arith.subf %44, %47 : vector<2x8x8xf32>
    %49 = math.exp %48 : vector<2x8x8xf32>
    %cst_54 = arith.constant dense<0.000000e+00> : vector<2x8xf32>
    %50 = vector.multi_reduction <add>, %49, %cst_54 [2] : vector<2x8x8xf32> to vector<2x8xf32>
    %51 = vector.shape_cast %50 : vector<2x8xf32> to vector<2x8x1xf32>
    %52 = tpu.reciprocal %51 {approx = true} : vector<2x8x1xf32> -> vector<2x8x1xf32>
    %53 = vector.broadcast %52 : vector<2x8x1xf32> to vector<2x8x8xf32>
    %54 = arith.mulf %49, %53 : vector<2x8x8xf32>
    "tpu.trace_start"() <{level = 10 : i32, message = "bqk,bkd->bqd"}> : () -> ()
    %cst_55 = arith.constant dense<0.000000e+00> : vector<2x8x8xf32>
    %55 = tpu.matmul %54, %40, %cst_55 {dimension_numbers = #tpu.dot_dimension_numbers<[2], [1], [1], [2], [0, 0, 0, 1, 1, 2], [0], [0]>} : vector<2x8x8xf32>, vector<2x8x8xf32>, vector<2x8x8xf32> -> vector<2x8x8xf32>
    "tpu.trace_stop"() : () -> ()
    %56 = vector.shape_cast %55 : vector<2x8x8xf32> to vector<16x8xf32>
    %57 = vector.extract_strided_slice %17 {offsets = [0, 0], sizes = [8, 32], strides = [1, 1]} : vector<32x32xf32> to vector<8x32xf32>
    %cst_56 = arith.constant dense<0.000000e+00> : vector<16x32xf32>
    %58 = tpu.matmul %56, %57, %cst_56 {dimension_numbers = #tpu.dot_dimension_numbers<[1], [0], [0], [1], [0, 0, 1, 1], [], []>} : vector<16x8xf32>, vector<8x32xf32>, vector<16x32xf32> -> vector<16x32xf32>
    %59 = vector.broadcast %18 : vector<1x32xf32> to vector<16x32xf32>
    %60 = arith.addf %59, %58 : vector<16x32xf32>
    %61 = vector.extract_strided_slice %35 {offsets = [0, 0, 8], sizes = [2, 8, 8], strides = [1, 1, 1]} : vector<2x8x32xf32> to vector<2x8x8xf32>
    %62 = vector.extract_strided_slice %36 {offsets = [0, 0, 8], sizes = [2, 8, 8], strides = [1, 1, 1]} : vector<2x8x32xf32> to vector<2x8x8xf32>
    %63 = vector.extract_strided_slice %37 {offsets = [0, 0, 8], sizes = [2, 8, 8], strides = [1, 1, 1]} : vector<2x8x32xf32> to vector<2x8x8xf32>
    "tpu.trace_start"() <{level = 10 : i32, message = "bqd,bkd->bqk"}> : () -> ()
    %cst_57 = arith.constant dense<0.000000e+00> : vector<2x8x8xf32>
    %64 = tpu.matmul %61, %62, %cst_57 {dimension_numbers = #tpu.dot_dimension_numbers<[2], [2], [1], [1], [0, 0, 0, 1, 1, 1], [0], [0]>} : vector<2x8x8xf32>, vector<2x8x8xf32>, vector<2x8x8xf32> -> vector<2x8x8xf32>
    "tpu.trace_stop"() : () -> ()
    %cst_58 = arith.constant 0.353553385 : f32
    %65 = vector.broadcast %cst_58 : f32 to vector<2x8x8xf32>
    %66 = arith.mulf %64, %65 : vector<2x8x8xf32>
    %67 = arith.addf %66, %9 : vector<2x8x8xf32>
    %cst_59 = arith.constant dense<0xFF800000> : vector<2x8xf32>
    %68 = vector.multi_reduction <maximumf>, %67, %cst_59 [2] : vector<2x8x8xf32> to vector<2x8xf32>
    %69 = vector.shape_cast %68 : vector<2x8xf32> to vector<2x8x1xf32>
    %70 = vector.broadcast %69 : vector<2x8x1xf32> to vector<2x8x8xf32>
    %71 = arith.subf %67, %70 : vector<2x8x8xf32>
    %72 = math.exp %71 : vector<2x8x8xf32>
    %cst_60 = arith.constant dense<0.000000e+00> : vector<2x8xf32>
    %73 = vector.multi_reduction <add>, %72, %cst_60 [2] : vector<2x8x8xf32> to vector<2x8xf32>
    %74 = vector.shape_cast %73 : vector<2x8xf32> to vector<2x8x1xf32>
    %75 = tpu.reciprocal %74 {approx = true} : vector<2x8x1xf32> -> vector<2x8x1xf32>
    %76 = vector.broadcast %75 : vector<2x8x1xf32> to vector<2x8x8xf32>
    %77 = arith.mulf %72, %76 : vector<2x8x8xf32>
    "tpu.trace_start"() <{level = 10 : i32, message = "bqk,bkd->bqd"}> : () -> ()
    %cst_61 = arith.constant dense<0.000000e+00> : vector<2x8x8xf32>
    %78 = tpu.matmul %77, %63, %cst_61 {dimension_numbers = #tpu.dot_dimension_numbers<[2], [1], [1], [2], [0, 0, 0, 1, 1, 2], [0], [0]>} : vector<2x8x8xf32>, vector<2x8x8xf32>, vector<2x8x8xf32> -> vector<2x8x8xf32>
    "tpu.trace_stop"() : () -> ()
    %79 = vector.shape_cast %78 : vector<2x8x8xf32> to vector<16x8xf32>
    %80 = vector.extract_strided_slice %17 {offsets = [8, 0], sizes = [8, 32], strides = [1, 1]} : vector<32x32xf32> to vector<8x32xf32>
    %cst_62 = arith.constant dense<0.000000e+00> : vector<16x32xf32>
    %81 = tpu.matmul %79, %80, %cst_62 {dimension_numbers = #tpu.dot_dimension_numbers<[1], [0], [0], [1], [0, 0, 1, 1], [], []>} : vector<16x8xf32>, vector<8x32xf32>, vector<16x32xf32> -> vector<16x32xf32>
    %82 = arith.addf %60, %81 : vector<16x32xf32>
    %83 = vector.extract_strided_slice %35 {offsets = [0, 0, 16], sizes = [2, 8, 8], strides = [1, 1, 1]} : vector<2x8x32xf32> to vector<2x8x8xf32>
    %84 = vector.extract_strided_slice %36 {offsets = [0, 0, 16], sizes = [2, 8, 8], strides = [1, 1, 1]} : vector<2x8x32xf32> to vector<2x8x8xf32>
    %85 = vector.extract_strided_slice %37 {offsets = [0, 0, 16], sizes = [2, 8, 8], strides = [1, 1, 1]} : vector<2x8x32xf32> to vector<2x8x8xf32>
    "tpu.trace_start"() <{level = 10 : i32, message = "bqd,bkd->bqk"}> : () -> ()
    %cst_63 = arith.constant dense<0.000000e+00> : vector<2x8x8xf32>
    %86 = tpu.matmul %83, %84, %cst_63 {dimension_numbers = #tpu.dot_dimension_numbers<[2], [2], [1], [1], [0, 0, 0, 1, 1, 1], [0], [0]>} : vector<2x8x8xf32>, vector<2x8x8xf32>, vector<2x8x8xf32> -> vector<2x8x8xf32>
    "tpu.trace_stop"() : () -> ()
    %cst_64 = arith.constant 0.353553385 : f32
    %87 = vector.broadcast %cst_64 : f32 to vector<2x8x8xf32>
    %88 = arith.mulf %86, %87 : vector<2x8x8xf32>
    %89 = arith.addf %88, %9 : vector<2x8x8xf32>
    %cst_65 = arith.constant dense<0xFF800000> : vector<2x8xf32>
    %90 = vector.multi_reduction <maximumf>, %89, %cst_65 [2] : vector<2x8x8xf32> to vector<2x8xf32>
    %91 = vector.shape_cast %90 : vector<2x8xf32> to vector<2x8x1xf32>
    %92 = vector.broadcast %91 : vector<2x8x1xf32> to vector<2x8x8xf32>
    %93 = arith.subf %89, %92 : vector<2x8x8xf32>
    %94 = math.exp %93 : vector<2x8x8xf32>
    %cst_66 = arith.constant dense<0.000000e+00> : vector<2x8xf32>
    %95 = vector.multi_reduction <add>, %94, %cst_66 [2] : vector<2x8x8xf32> to vector<2x8xf32>
    %96 = vector.shape_cast %95 : vector<2x8xf32> to vector<2x8x1xf32>
    %97 = tpu.reciprocal %96 {approx = true} : vector<2x8x1xf32> -> vector<2x8x1xf32>
    %98 = vector.broadcast %97 : vector<2x8x1xf32> to vector<2x8x8xf32>
    %99 = arith.mulf %94, %98 : vector<2x8x8xf32>
    "tpu.trace_start"() <{level = 10 : i32, message = "bqk,bkd->bqd"}> : () -> ()
    %cst_67 = arith.constant dense<0.000000e+00> : vector<2x8x8xf32>
    %100 = tpu.matmul %99, %85, %cst_67 {dimension_numbers = #tpu.dot_dimension_numbers<[2], [1], [1], [2], [0, 0, 0, 1, 1, 2], [0], [0]>} : vector<2x8x8xf32>, vector<2x8x8xf32>, vector<2x8x8xf32> -> vector<2x8x8xf32>
    "tpu.trace_stop"() : () -> ()
    %101 = vector.shape_cast %100 : vector<2x8x8xf32> to vector<16x8xf32>
    %102 = vector.extract_strided_slice %17 {offsets = [16, 0], sizes = [8, 32], strides = [1, 1]} : vector<32x32xf32> to vector<8x32xf32>
    %cst_68 = arith.constant dense<0.000000e+00> : vector<16x32xf32>
    %103 = tpu.matmul %101, %102, %cst_68 {dimension_numbers = #tpu.dot_dimension_numbers<[1], [0], [0], [1], [0, 0, 1, 1], [], []>} : vector<16x8xf32>, vector<8x32xf32>, vector<16x32xf32> -> vector<16x32xf32>
    %104 = arith.addf %82, %103 : vector<16x32xf32>
    %105 = vector.extract_strided_slice %35 {offsets = [0, 0, 24], sizes = [2, 8, 8], strides = [1, 1, 1]} : vector<2x8x32xf32> to vector<2x8x8xf32>
    %106 = vector.extract_strided_slice %36 {offsets = [0, 0, 24], sizes = [2, 8, 8], strides = [1, 1, 1]} : vector<2x8x32xf32> to vector<2x8x8xf32>
    %107 = vector.extract_strided_slice %37 {offsets = [0, 0, 24], sizes = [2, 8, 8], strides = [1, 1, 1]} : vector<2x8x32xf32> to vector<2x8x8xf32>
    "tpu.trace_start"() <{level = 10 : i32, message = "bqd,bkd->bqk"}> : () -> ()
    %cst_69 = arith.constant dense<0.000000e+00> : vector<2x8x8xf32>
    %108 = tpu.matmul %105, %106, %cst_69 {dimension_numbers = #tpu.dot_dimension_numbers<[2], [2], [1], [1], [0, 0, 0, 1, 1, 1], [0], [0]>} : vector<2x8x8xf32>, vector<2x8x8xf32>, vector<2x8x8xf32> -> vector<2x8x8xf32>
    "tpu.trace_stop"() : () -> ()
    %cst_70 = arith.constant 0.353553385 : f32
    %109 = vector.broadcast %cst_70 : f32 to vector<2x8x8xf32>
    %110 = arith.mulf %108, %109 : vector<2x8x8xf32>
    %111 = arith.addf %110, %9 : vector<2x8x8xf32>
    %cst_71 = arith.constant dense<0xFF800000> : vector<2x8xf32>
    %112 = vector.multi_reduction <maximumf>, %111, %cst_71 [2] : vector<2x8x8xf32> to vector<2x8xf32>
    %113 = vector.shape_cast %112 : vector<2x8xf32> to vector<2x8x1xf32>
    %114 = vector.broadcast %113 : vector<2x8x1xf32> to vector<2x8x8xf32>
    %115 = arith.subf %111, %114 : vector<2x8x8xf32>
    %116 = math.exp %115 : vector<2x8x8xf32>
    %cst_72 = arith.constant dense<0.000000e+00> : vector<2x8xf32>
    %117 = vector.multi_reduction <add>, %116, %cst_72 [2] : vector<2x8x8xf32> to vector<2x8xf32>
    %118 = vector.shape_cast %117 : vector<2x8xf32> to vector<2x8x1xf32>
    %119 = tpu.reciprocal %118 {approx = true} : vector<2x8x1xf32> -> vector<2x8x1xf32>
    %120 = vector.broadcast %119 : vector<2x8x1xf32> to vector<2x8x8xf32>
    %121 = arith.mulf %116, %120 : vector<2x8x8xf32>
    "tpu.trace_start"() <{level = 10 : i32, message = "bqk,bkd->bqd"}> : () -> ()
    %cst_73 = arith.constant dense<0.000000e+00> : vector<2x8x8xf32>
    %122 = tpu.matmul %121, %107, %cst_73 {dimension_numbers = #tpu.dot_dimension_numbers<[2], [1], [1], [2], [0, 0, 0, 1, 1, 2], [0], [0]>} : vector<2x8x8xf32>, vector<2x8x8xf32>, vector<2x8x8xf32> -> vector<2x8x8xf32>
    "tpu.trace_stop"() : () -> ()
    %123 = vector.shape_cast %122 : vector<2x8x8xf32> to vector<16x8xf32>
    %124 = vector.extract_strided_slice %17 {offsets = [24, 0], sizes = [8, 32], strides = [1, 1]} : vector<32x32xf32> to vector<8x32xf32>
    %cst_74 = arith.constant dense<0.000000e+00> : vector<16x32xf32>
    %125 = tpu.matmul %123, %124, %cst_74 {dimension_numbers = #tpu.dot_dimension_numbers<[1], [0], [0], [1], [0, 0, 1, 1], [], []>} : vector<16x8xf32>, vector<8x32xf32>, vector<16x32xf32> -> vector<16x32xf32>
    %126 = arith.addf %104, %125 : vector<16x32xf32>
    %127 = arith.addf %1, %126 : vector<16x32xf32>
    %cst_75 = arith.constant dense<0.000000e+00> : vector<16xf32>
    %128 = vector.multi_reduction <add>, %127, %cst_75 [1] : vector<16x32xf32> to vector<16xf32>
    %129 = vector.shape_cast %128 : vector<16xf32> to vector<16x1xf32>
    %cst_76 = arith.constant 3.200000e+01 : f32
    %130 = vector.broadcast %cst_76 : f32 to vector<16x1xf32>
    %131 = arith.divf %129, %130 : vector<16x1xf32>
    %132 = arith.mulf %127, %127 : vector<16x32xf32>
    %cst_77 = arith.constant dense<0.000000e+00> : vector<16xf32>
    %133 = vector.multi_reduction <add>, %132, %cst_77 [1] : vector<16x32xf32> to vector<16xf32>
    %134 = vector.shape_cast %133 : vector<16xf32> to vector<16x1xf32>
    %cst_78 = arith.constant 3.200000e+01 : f32
    %135 = vector.broadcast %cst_78 : f32 to vector<16x1xf32>
    %136 = arith.divf %134, %135 : vector<16x1xf32>
    %137 = arith.mulf %131, %131 : vector<16x1xf32>
    %138 = arith.subf %136, %137 : vector<16x1xf32>
    %139 = vector.broadcast %131 : vector<16x1xf32> to vector<16x32xf32>
    %140 = arith.subf %127, %139 : vector<16x32xf32>
    %cst_79 = arith.constant 9.99999974E-6 : f32
    %141 = vector.broadcast %cst_79 : f32 to vector<16x1xf32>
    %142 = arith.addf %138, %141 : vector<16x1xf32>
    %143 = math.rsqrt %142 : vector<16x1xf32>
    %144 = vector.broadcast %143 : vector<16x1xf32> to vector<16x32xf32>
    %145 = arith.mulf %140, %144 : vector<16x32xf32>
    %146 = vector.broadcast %27 : vector<1x32xf32> to vector<16x32xf32>
    %147 = arith.mulf %145, %146 : vector<16x32xf32>
    %148 = vector.broadcast %28 : vector<1x32xf32> to vector<16x32xf32>
    %149 = arith.addf %147, %148 : vector<16x32xf32>
    %cst_80 = arith.constant dense<0.000000e+00> : vector<16x32xf32>
    %150 = tpu.matmul %149, %19, %cst_80 {dimension_numbers = #tpu.dot_dimension_numbers<[1], [0], [0], [1], [0, 0, 1, 1], [], []>} : vector<16x32xf32>, vector<32x32xf32>, vector<16x32xf32> -> vector<16x32xf32>
    %151 = vector.shape_cast %150 : vector<16x32xf32> to vector<2x8x32xf32>
    %cst_81 = arith.constant dense<0.000000e+00> : vector<16x64xf32>
    %152 = tpu.matmul %3, %20, %cst_81 {dimension_numbers = #tpu.dot_dimension_numbers<[1], [0], [0], [1], [0, 0, 1, 1], [], []>} : vector<16x32xf32>, vector<32x64xf32>, vector<16x64xf32> -> vector<16x64xf32>
    %153 = vector.shape_cast %152 : vector<16x64xf32> to vector<2x8x64xf32>
    %154 = vector.extract_strided_slice %153 {offsets = [0, 0, 0], sizes = [2, 8, 32], strides = [1, 1, 1]} : vector<2x8x64xf32> to vector<2x8x32xf32>
    %155 = vector.extract_strided_slice %153 {offsets = [0, 0, 32], sizes = [2, 8, 32], strides = [1, 1, 1]} : vector<2x8x64xf32> to vector<2x8x32xf32>
    %156 = vector.extract_strided_slice %151 {offsets = [0, 0, 0], sizes = [2, 8, 8], strides = [1, 1, 1]} : vector<2x8x32xf32> to vector<2x8x8xf32>
    %157 = vector.extract_strided_slice %154 {offsets = [0, 0, 0], sizes = [2, 8, 8], strides = [1, 1, 1]} : vector<2x8x32xf32> to vector<2x8x8xf32>
    %158 = vector.extract_strided_slice %155 {offsets = [0, 0, 0], sizes = [2, 8, 8], strides = [1, 1, 1]} : vector<2x8x32xf32> to vector<2x8x8xf32>
    "tpu.trace_start"() <{level = 10 : i32, message = "bqd,bkd->bqk"}> : () -> ()
    %cst_82 = arith.constant dense<0.000000e+00> : vector<2x8x8xf32>
    %159 = tpu.matmul %156, %157, %cst_82 {dimension_numbers = #tpu.dot_dimension_numbers<[2], [2], [1], [1], [0, 0, 0, 1, 1, 1], [0], [0]>} : vector<2x8x8xf32>, vector<2x8x8xf32>, vector<2x8x8xf32> -> vector<2x8x8xf32>
    "tpu.trace_stop"() : () -> ()
    %cst_83 = arith.constant 0.353553385 : f32
    %160 = vector.broadcast %cst_83 : f32 to vector<2x8x8xf32>
    %161 = arith.mulf %159, %160 : vector<2x8x8xf32>
    %162 = arith.addf %161, %15 : vector<2x8x8xf32>
    %cst_84 = arith.constant dense<0xFF800000> : vector<2x8xf32>
    %163 = vector.multi_reduction <maximumf>, %162, %cst_84 [2] : vector<2x8x8xf32> to vector<2x8xf32>
    %164 = vector.shape_cast %163 : vector<2x8xf32> to vector<2x8x1xf32>
    %165 = vector.broadcast %164 : vector<2x8x1xf32> to vector<2x8x8xf32>
    %166 = arith.subf %162, %165 : vector<2x8x8xf32>
    %167 = math.exp %166 : vector<2x8x8xf32>
    %cst_85 = arith.constant dense<0.000000e+00> : vector<2x8xf32>
    %168 = vector.multi_reduction <add>, %167, %cst_85 [2] : vector<2x8x8xf32> to vector<2x8xf32>
    %169 = vector.shape_cast %168 : vector<2x8xf32> to vector<2x8x1xf32>
    %170 = tpu.reciprocal %169 {approx = true} : vector<2x8x1xf32> -> vector<2x8x1xf32>
    %171 = vector.broadcast %170 : vector<2x8x1xf32> to vector<2x8x8xf32>
    %172 = arith.mulf %167, %171 : vector<2x8x8xf32>
    "tpu.trace_start"() <{level = 10 : i32, message = "bqk,bkd->bqd"}> : () -> ()
    %cst_86 = arith.constant dense<0.000000e+00> : vector<2x8x8xf32>
    %173 = tpu.matmul %172, %158, %cst_86 {dimension_numbers = #tpu.dot_dimension_numbers<[2], [1], [1], [2], [0, 0, 0, 1, 1, 2], [0], [0]>} : vector<2x8x8xf32>, vector<2x8x8xf32>, vector<2x8x8xf32> -> vector<2x8x8xf32>
    "tpu.trace_stop"() : () -> ()
    %174 = vector.shape_cast %173 : vector<2x8x8xf32> to vector<16x8xf32>
    %175 = vector.extract_strided_slice %21 {offsets = [0, 0], sizes = [8, 32], strides = [1, 1]} : vector<32x32xf32> to vector<8x32xf32>
    %cst_87 = arith.constant dense<0.000000e+00> : vector<16x32xf32>
    %176 = tpu.matmul %174, %175, %cst_87 {dimension_numbers = #tpu.dot_dimension_numbers<[1], [0], [0], [1], [0, 0, 1, 1], [], []>} : vector<16x8xf32>, vector<8x32xf32>, vector<16x32xf32> -> vector<16x32xf32>
    %177 = vector.broadcast %22 : vector<1x32xf32> to vector<16x32xf32>
    %178 = arith.addf %177, %176 : vector<16x32xf32>
    %179 = vector.extract_strided_slice %151 {offsets = [0, 0, 8], sizes = [2, 8, 8], strides = [1, 1, 1]} : vector<2x8x32xf32> to vector<2x8x8xf32>
    %180 = vector.extract_strided_slice %154 {offsets = [0, 0, 8], sizes = [2, 8, 8], strides = [1, 1, 1]} : vector<2x8x32xf32> to vector<2x8x8xf32>
    %181 = vector.extract_strided_slice %155 {offsets = [0, 0, 8], sizes = [2, 8, 8], strides = [1, 1, 1]} : vector<2x8x32xf32> to vector<2x8x8xf32>
    "tpu.trace_start"() <{level = 10 : i32, message = "bqd,bkd->bqk"}> : () -> ()
    %cst_88 = arith.constant dense<0.000000e+00> : vector<2x8x8xf32>
    %182 = tpu.matmul %179, %180, %cst_88 {dimension_numbers = #tpu.dot_dimension_numbers<[2], [2], [1], [1], [0, 0, 0, 1, 1, 1], [0], [0]>} : vector<2x8x8xf32>, vector<2x8x8xf32>, vector<2x8x8xf32> -> vector<2x8x8xf32>
    "tpu.trace_stop"() : () -> ()
    %cst_89 = arith.constant 0.353553385 : f32
    %183 = vector.broadcast %cst_89 : f32 to vector<2x8x8xf32>
    %184 = arith.mulf %182, %183 : vector<2x8x8xf32>
    %185 = arith.addf %184, %15 : vector<2x8x8xf32>
    %cst_90 = arith.constant dense<0xFF800000> : vector<2x8xf32>
    %186 = vector.multi_reduction <maximumf>, %185, %cst_90 [2] : vector<2x8x8xf32> to vector<2x8xf32>
    %187 = vector.shape_cast %186 : vector<2x8xf32> to vector<2x8x1xf32>
    %188 = vector.broadcast %187 : vector<2x8x1xf32> to vector<2x8x8xf32>
    %189 = arith.subf %185, %188 : vector<2x8x8xf32>
    %190 = math.exp %189 : vector<2x8x8xf32>
    %cst_91 = arith.constant dense<0.000000e+00> : vector<2x8xf32>
    %191 = vector.multi_reduction <add>, %190, %cst_91 [2] : vector<2x8x8xf32> to vector<2x8xf32>
    %192 = vector.shape_cast %191 : vector<2x8xf32> to vector<2x8x1xf32>
    %193 = tpu.reciprocal %192 {approx = true} : vector<2x8x1xf32> -> vector<2x8x1xf32>
    %194 = vector.broadcast %193 : vector<2x8x1xf32> to vector<2x8x8xf32>
    %195 = arith.mulf %190, %194 : vector<2x8x8xf32>
    "tpu.trace_start"() <{level = 10 : i32, message = "bqk,bkd->bqd"}> : () -> ()
    %cst_92 = arith.constant dense<0.000000e+00> : vector<2x8x8xf32>
    %196 = tpu.matmul %195, %181, %cst_92 {dimension_numbers = #tpu.dot_dimension_numbers<[2], [1], [1], [2], [0, 0, 0, 1, 1, 2], [0], [0]>} : vector<2x8x8xf32>, vector<2x8x8xf32>, vector<2x8x8xf32> -> vector<2x8x8xf32>
    "tpu.trace_stop"() : () -> ()
    %197 = vector.shape_cast %196 : vector<2x8x8xf32> to vector<16x8xf32>
    %198 = vector.extract_strided_slice %21 {offsets = [8, 0], sizes = [8, 32], strides = [1, 1]} : vector<32x32xf32> to vector<8x32xf32>
    %cst_93 = arith.constant dense<0.000000e+00> : vector<16x32xf32>
    %199 = tpu.matmul %197, %198, %cst_93 {dimension_numbers = #tpu.dot_dimension_numbers<[1], [0], [0], [1], [0, 0, 1, 1], [], []>} : vector<16x8xf32>, vector<8x32xf32>, vector<16x32xf32> -> vector<16x32xf32>
    %200 = arith.addf %178, %199 : vector<16x32xf32>
    %201 = vector.extract_strided_slice %151 {offsets = [0, 0, 16], sizes = [2, 8, 8], strides = [1, 1, 1]} : vector<2x8x32xf32> to vector<2x8x8xf32>
    %202 = vector.extract_strided_slice %154 {offsets = [0, 0, 16], sizes = [2, 8, 8], strides = [1, 1, 1]} : vector<2x8x32xf32> to vector<2x8x8xf32>
    %203 = vector.extract_strided_slice %155 {offsets = [0, 0, 16], sizes = [2, 8, 8], strides = [1, 1, 1]} : vector<2x8x32xf32> to vector<2x8x8xf32>
    "tpu.trace_start"() <{level = 10 : i32, message = "bqd,bkd->bqk"}> : () -> ()
    %cst_94 = arith.constant dense<0.000000e+00> : vector<2x8x8xf32>
    %204 = tpu.matmul %201, %202, %cst_94 {dimension_numbers = #tpu.dot_dimension_numbers<[2], [2], [1], [1], [0, 0, 0, 1, 1, 1], [0], [0]>} : vector<2x8x8xf32>, vector<2x8x8xf32>, vector<2x8x8xf32> -> vector<2x8x8xf32>
    "tpu.trace_stop"() : () -> ()
    %cst_95 = arith.constant 0.353553385 : f32
    %205 = vector.broadcast %cst_95 : f32 to vector<2x8x8xf32>
    %206 = arith.mulf %204, %205 : vector<2x8x8xf32>
    %207 = arith.addf %206, %15 : vector<2x8x8xf32>
    %cst_96 = arith.constant dense<0xFF800000> : vector<2x8xf32>
    %208 = vector.multi_reduction <maximumf>, %207, %cst_96 [2] : vector<2x8x8xf32> to vector<2x8xf32>
    %209 = vector.shape_cast %208 : vector<2x8xf32> to vector<2x8x1xf32>
    %210 = vector.broadcast %209 : vector<2x8x1xf32> to vector<2x8x8xf32>
    %211 = arith.subf %207, %210 : vector<2x8x8xf32>
    %212 = math.exp %211 : vector<2x8x8xf32>
    %cst_97 = arith.constant dense<0.000000e+00> : vector<2x8xf32>
    %213 = vector.multi_reduction <add>, %212, %cst_97 [2] : vector<2x8x8xf32> to vector<2x8xf32>
    %214 = vector.shape_cast %213 : vector<2x8xf32> to vector<2x8x1xf32>
    %215 = tpu.reciprocal %214 {approx = true} : vector<2x8x1xf32> -> vector<2x8x1xf32>
    %216 = vector.broadcast %215 : vector<2x8x1xf32> to vector<2x8x8xf32>
    %217 = arith.mulf %212, %216 : vector<2x8x8xf32>
    "tpu.trace_start"() <{level = 10 : i32, message = "bqk,bkd->bqd"}> : () -> ()
    %cst_98 = arith.constant dense<0.000000e+00> : vector<2x8x8xf32>
    %218 = tpu.matmul %217, %203, %cst_98 {dimension_numbers = #tpu.dot_dimension_numbers<[2], [1], [1], [2], [0, 0, 0, 1, 1, 2], [0], [0]>} : vector<2x8x8xf32>, vector<2x8x8xf32>, vector<2x8x8xf32> -> vector<2x8x8xf32>
    "tpu.trace_stop"() : () -> ()
    %219 = vector.shape_cast %218 : vector<2x8x8xf32> to vector<16x8xf32>
    %220 = vector.extract_strided_slice %21 {offsets = [16, 0], sizes = [8, 32], strides = [1, 1]} : vector<32x32xf32> to vector<8x32xf32>
    %cst_99 = arith.constant dense<0.000000e+00> : vector<16x32xf32>
    %221 = tpu.matmul %219, %220, %cst_99 {dimension_numbers = #tpu.dot_dimension_numbers<[1], [0], [0], [1], [0, 0, 1, 1], [], []>} : vector<16x8xf32>, vector<8x32xf32>, vector<16x32xf32> -> vector<16x32xf32>
    %222 = arith.addf %200, %221 : vector<16x32xf32>
    %223 = vector.extract_strided_slice %151 {offsets = [0, 0, 24], sizes = [2, 8, 8], strides = [1, 1, 1]} : vector<2x8x32xf32> to vector<2x8x8xf32>
    %224 = vector.extract_strided_slice %154 {offsets = [0, 0, 24], sizes = [2, 8, 8], strides = [1, 1, 1]} : vector<2x8x32xf32> to vector<2x8x8xf32>
    %225 = vector.extract_strided_slice %155 {offsets = [0, 0, 24], sizes = [2, 8, 8], strides = [1, 1, 1]} : vector<2x8x32xf32> to vector<2x8x8xf32>
    "tpu.trace_start"() <{level = 10 : i32, message = "bqd,bkd->bqk"}> : () -> ()
    %cst_100 = arith.constant dense<0.000000e+00> : vector<2x8x8xf32>
    %226 = tpu.matmul %223, %224, %cst_100 {dimension_numbers = #tpu.dot_dimension_numbers<[2], [2], [1], [1], [0, 0, 0, 1, 1, 1], [0], [0]>} : vector<2x8x8xf32>, vector<2x8x8xf32>, vector<2x8x8xf32> -> vector<2x8x8xf32>
    "tpu.trace_stop"() : () -> ()
    %cst_101 = arith.constant 0.353553385 : f32
    %227 = vector.broadcast %cst_101 : f32 to vector<2x8x8xf32>
    %228 = arith.mulf %226, %227 : vector<2x8x8xf32>
    %229 = arith.addf %228, %15 : vector<2x8x8xf32>
    %cst_102 = arith.constant dense<0xFF800000> : vector<2x8xf32>
    %230 = vector.multi_reduction <maximumf>, %229, %cst_102 [2] : vector<2x8x8xf32> to vector<2x8xf32>
    %231 = vector.shape_cast %230 : vector<2x8xf32> to vector<2x8x1xf32>
    %232 = vector.broadcast %231 : vector<2x8x1xf32> to vector<2x8x8xf32>
    %233 = arith.subf %229, %232 : vector<2x8x8xf32>
    %234 = math.exp %233 : vector<2x8x8xf32>
    %cst_103 = arith.constant dense<0.000000e+00> : vector<2x8xf32>
    %235 = vector.multi_reduction <add>, %234, %cst_103 [2] : vector<2x8x8xf32> to vector<2x8xf32>
    %236 = vector.shape_cast %235 : vector<2x8xf32> to vector<2x8x1xf32>
    %237 = tpu.reciprocal %236 {approx = true} : vector<2x8x1xf32> -> vector<2x8x1xf32>
    %238 = vector.broadcast %237 : vector<2x8x1xf32> to vector<2x8x8xf32>
    %239 = arith.mulf %234, %238 : vector<2x8x8xf32>
    "tpu.trace_start"() <{level = 10 : i32, message = "bqk,bkd->bqd"}> : () -> ()
    %cst_104 = arith.constant dense<0.000000e+00> : vector<2x8x8xf32>
    %240 = tpu.matmul %239, %225, %cst_104 {dimension_numbers = #tpu.dot_dimension_numbers<[2], [1], [1], [2], [0, 0, 0, 1, 1, 2], [0], [0]>} : vector<2x8x8xf32>, vector<2x8x8xf32>, vector<2x8x8xf32> -> vector<2x8x8xf32>
    "tpu.trace_stop"() : () -> ()
    %241 = vector.shape_cast %240 : vector<2x8x8xf32> to vector<16x8xf32>
    %242 = vector.extract_strided_slice %21 {offsets = [24, 0], sizes = [8, 32], strides = [1, 1]} : vector<32x32xf32> to vector<8x32xf32>
    %cst_105 = arith.constant dense<0.000000e+00> : vector<16x32xf32>
    %243 = tpu.matmul %241, %242, %cst_105 {dimension_numbers = #tpu.dot_dimension_numbers<[1], [0], [0], [1], [0, 0, 1, 1], [], []>} : vector<16x8xf32>, vector<8x32xf32>, vector<16x32xf32> -> vector<16x32xf32>
    %244 = arith.addf %222, %243 : vector<16x32xf32>
    %245 = arith.addf %149, %244 : vector<16x32xf32>
    %cst_106 = arith.constant dense<0.000000e+00> : vector<16xf32>
    %246 = vector.multi_reduction <add>, %245, %cst_106 [1] : vector<16x32xf32> to vector<16xf32>
    %247 = vector.shape_cast %246 : vector<16xf32> to vector<16x1xf32>
    %cst_107 = arith.constant 3.200000e+01 : f32
    %248 = vector.broadcast %cst_107 : f32 to vector<16x1xf32>
    %249 = arith.divf %247, %248 : vector<16x1xf32>
    %250 = arith.mulf %245, %245 : vector<16x32xf32>
    %cst_108 = arith.constant dense<0.000000e+00> : vector<16xf32>
    %251 = vector.multi_reduction <add>, %250, %cst_108 [1] : vector<16x32xf32> to vector<16xf32>
    %252 = vector.shape_cast %251 : vector<16xf32> to vector<16x1xf32>
    %cst_109 = arith.constant 3.200000e+01 : f32
    %253 = vector.broadcast %cst_109 : f32 to vector<16x1xf32>
    %254 = arith.divf %252, %253 : vector<16x1xf32>
    %255 = arith.mulf %249, %249 : vector<16x1xf32>
    %256 = arith.subf %254, %255 : vector<16x1xf32>
    %257 = vector.broadcast %249 : vector<16x1xf32> to vector<16x32xf32>
    %258 = arith.subf %245, %257 : vector<16x32xf32>
    %cst_110 = arith.constant 9.99999974E-6 : f32
    %259 = vector.broadcast %cst_110 : f32 to vector<16x1xf32>
    %260 = arith.addf %256, %259 : vector<16x1xf32>
    %261 = math.rsqrt %260 : vector<16x1xf32>
    %262 = vector.broadcast %261 : vector<16x1xf32> to vector<16x32xf32>
    %263 = arith.mulf %258, %262 : vector<16x32xf32>
    %264 = vector.broadcast %29 : vector<1x32xf32> to vector<16x32xf32>
    %265 = arith.mulf %263, %264 : vector<16x32xf32>
    %266 = vector.broadcast %30 : vector<1x32xf32> to vector<16x32xf32>
    %267 = arith.addf %265, %266 : vector<16x32xf32>
    %cst_111 = arith.constant dense<0.000000e+00> : vector<16x64xf32>
    %268 = tpu.matmul %267, %23, %cst_111 {dimension_numbers = #tpu.dot_dimension_numbers<[1], [0], [0], [1], [0, 0, 1, 1], [], []>} : vector<16x32xf32>, vector<32x64xf32>, vector<16x64xf32> -> vector<16x64xf32>
    %269 = vector.broadcast %24 : vector<1x64xf32> to vector<16x64xf32>
    %270 = arith.addf %268, %269 : vector<16x64xf32>
    %cst_112 = arith.constant 0.000000e+00 : f32
    %271 = vector.broadcast %cst_112 : f32 to vector<16x64xf32>
    %272 = arith.maximumf %270, %271 : vector<16x64xf32>
    %cst_113 = arith.constant dense<0.000000e+00> : vector<16x32xf32>
    %273 = tpu.matmul %272, %25, %cst_113 {dimension_numbers = #tpu.dot_dimension_numbers<[1], [0], [0], [1], [0, 0, 1, 1], [], []>} : vector<16x64xf32>, vector<64x32xf32>, vector<16x32xf32> -> vector<16x32xf32>
    %274 = vector.broadcast %26 : vector<1x32xf32> to vector<16x32xf32>
    %275 = arith.addf %273, %274 : vector<16x32xf32>
    %276 = arith.addf %267, %275 : vector<16x32xf32>
    %cst_114 = arith.constant dense<0.000000e+00> : vector<16xf32>
    %277 = vector.multi_reduction <add>, %276, %cst_114 [1] : vector<16x32xf32> to vector<16xf32>
    %278 = vector.shape_cast %277 : vector<16xf32> to vector<16x1xf32>
    %cst_115 = arith.constant 3.200000e+01 : f32
    %279 = vector.broadcast %cst_115 : f32 to vector<16x1xf32>
    %280 = arith.divf %278, %279 : vector<16x1xf32>
    %281 = arith.mulf %276, %276 : vector<16x32xf32>
    %cst_116 = arith.constant dense<0.000000e+00> : vector<16xf32>
    %282 = vector.multi_reduction <add>, %281, %cst_116 [1] : vector<16x32xf32> to vector<16xf32>
    %283 = vector.shape_cast %282 : vector<16xf32> to vector<16x1xf32>
    %cst_117 = arith.constant 3.200000e+01 : f32
    %284 = vector.broadcast %cst_117 : f32 to vector<16x1xf32>
    %285 = arith.divf %283, %284 : vector<16x1xf32>
    %286 = arith.mulf %280, %280 : vector<16x1xf32>
    %287 = arith.subf %285, %286 : vector<16x1xf32>
    %288 = vector.broadcast %280 : vector<16x1xf32> to vector<16x32xf32>
    %289 = arith.subf %276, %288 : vector<16x32xf32>
    %cst_118 = arith.constant 9.99999974E-6 : f32
    %290 = vector.broadcast %cst_118 : f32 to vector<16x1xf32>
    %291 = arith.addf %287, %290 : vector<16x1xf32>
    %292 = math.rsqrt %291 : vector<16x1xf32>
    %293 = vector.broadcast %292 : vector<16x1xf32> to vector<16x32xf32>
    %294 = arith.mulf %289, %293 : vector<16x32xf32>
    %295 = vector.broadcast %31 : vector<1x32xf32> to vector<16x32xf32>
    %296 = arith.mulf %294, %295 : vector<16x32xf32>
    %297 = vector.broadcast %32 : vector<1x32xf32> to vector<16x32xf32>
    %298 = arith.addf %296, %297 : vector<16x32xf32>
    %c0_119 = arith.constant 0 : index
    %c0_120 = arith.constant 0 : index
    %299 = vector.load %arg21[%c0_119, %c0_120] : memref<16x32xf32, #tpu.memory_space<vmem>>, vector<16x32xf32>
    tpu.vector_store %arg21[%c0_119, %c0_120], %298 {strides = array<i32>} : memref<16x32xf32, #tpu.memory_space<vmem>>, vector<16x32xf32>,
    return
  }
}

</mosaic_0001>

<bundles_post_ra>
// kernel: transformer_decoder_layer.1
= control target key start
LH: loop header
LB: loop body
LE: loop exit
PB: predicated region body
PF: predicated region fallthrough
CT: control target
= control target key end

     0   :  { %s5347_s0 = inlined_call_operand.vmem [shape: f32[2,8,32], index: 0, kind: input, shape index: {}]   ;;  %s5348_s1 = inlined_call_operand.vmem [shape: f32[2,8,32], index: 1, kind: input, shape index: {}]   ;;  %s5349_s2 = inlined_call_operand.vmem [shape: f32[2,8,8], index: 2, kind: input, shape index: {}]   ;;  %s5350_s3 = inlined_call_operand.vmem [shape: f32[2,8,8], index: 3, kind: input, shape index: {}]   ;;  %s5351_s4 = inlined_call_operand.vmem [shape: f32[32,96], index: 4, kind: input, shape index: {}]   ;;  %s5352_s5 = inlined_call_operand.vmem [shape: f32[32,32], index: 5, kind: input, shape index: {}]   ;;  %s5353_s6 = inlined_call_operand.vmem [shape: f32[1,32], index: 6, kind: input, shape index: {}]   ;;  %s5354_s7 = inlined_call_operand.vmem [shape: f32[32,32], index: 7, kind: input, shape index: {}]   ;;  %s5355_s8 = inlined_call_operand.vmem [shape: f32[32,64], index: 8, kind: input, shape index: {}]   ;;  %s5356_s9 = inlined_call_operand.vmem [shape: f32[32,32], index: 9, kind: input, shape index: {}]   ;;  %s5357_s10 = inlined_call_operand.vmem [shape: f32[1,32], index: 10, kind: input, shape index: {}]   ;;  %s5358_s11 = inlined_call_operand.vmem [shape: f32[32,64], index: 11, kind: input, shape index: {}]   ;;  %s5359_s12 = inlined_call_operand.vmem [shape: f32[1,64], index: 12, kind: input, shape index: {}]   ;;  %s5360_s13 = inlined_call_operand.vmem [shape: f32[64,32], index: 13, kind: input, shape index: {}]   ;;  %s5361_s14 = inlined_call_operand.vmem [shape: f32[1,32], index: 14, kind: input, shape index: {}]   ;;  %s5362_s15 = inlined_call_operand.vmem [shape: f32[1,32], index: 15, kind: input, shape index: {}]   ;;  %s5363_s16 = inlined_call_operand.vmem [shape: f32[1,32], index: 16, kind: input, shape index: {}]   ;;  %s5364_s17 = inlined_call_operand.vmem [shape: f32[1,32], index: 17, kind: input, shape index: {}]   ;;  %s5365_s18 = inlined_call_operand.vmem [shape: f32[1,32], index: 18, kind: input, shape index: {}]   ;;  %s5366_s19 = inlined_call_operand.vmem [shape: f32[1,32], index: 19, kind: input, shape index: {}]   ;;  %s5367_s20 = inlined_call_operand.vmem [shape: f32[1,32], index: 20, kind: input, shape index: {}]   ;;  %s5368_s21 = inlined_call_operand.hbm [shape: f32[16,32], index: 21, kind: output, shape index: {}]  }
   0x1   :  { %5379 = sst [smem:[#allocation5_spill]] %s5347_s0 }
   0x2   :  { %5380 = sst [smem:[#allocation6_spill]] %s5348_s1 }
   0x3   :  { %5381 = sst [smem:[#allocation7_spill]] %s5349_s2 }
   0x4   :  { %5382 = sst [smem:[#allocation8_spill]] %s5350_s3 }
   0x5   :  { %5383 = sst [smem:[#allocation9_spill]] %s5351_s4 }
   0x6   :  { %5384 = sst [smem:[#allocation10_spill]] %s5352_s5 }
   0x7   :  { %s5385_s26 = sld [smem:[#allocation9_spill]]  ;;  %vm127_vm0 = vcmask 261120   ;;  %s5386_s22 = sld [smem:[#allocation5_spill]] }
   0xd   :  { %v85_v0 = vld [vmem:[%s5385_s26] sm:$0xff]  ;;  %v86_v1 = vld [vmem:[%s5385_s26 + $0x8] sm:$0xff]  ;;  %v87_v2 = vld [vmem:[%s5385_s26 + $0x10] sm:$0xff] }
   0xe   :  { %v4523_v3 = vpack.c.bf16 %v86_v1, %v85_v0  ;;  %v88_v4 = vld [vmem:[%s5385_s26 + $0x18] sm:$0xff]  ;;  %v4844_v5 = vld [vmem:[%s5386_s22] sm:$0xff] }
   0xf   :  { %v4527_v6 = vpack.c.bf16 %v88_v4, %v87_v2  ;;  %4268 = vmatprep.mubr.msk.f32.mxu1 %vm127_vm0, %v4844_v5 }
  0x10   :  { %26 = vsyncpa [#allocation3], 0  ;;  %4524 = vmatprep.subr.bf16.mxu1 %v4523_v3  ;;  %v4851_v7 = vld [vmem:[%s5386_s22 + $0x8] sm:$0xff]  ;;  %v4703_v8 = vmov 0.0   ;;  %vm4704_vm1 = vmmov 0   ;;  %s4705_s24 = smov 96  }
  0x11   :  { %4526 = vmatpush3.bf16.msra.mxu1 %v4523_v3  ;;  %4281 = vmatprep.subr.mxu0 %v4703_v8  ;;  %vm212_vm2 = vcmask 64512   ;;  %s5387_s26 = sld [smem:[#allocation7_spill]]  ;;  %s4706_s28 = smov 64   ;;  %vm3906_vm7 = vcmask 523264  }
  0x12   :  { %4528 = vmatprep.subr.bf16.mxu1 %v4527_v6  ;;  %4283 = vmatprep.mubr.msk.f32.mxu0 %vm4704_vm1, %v4703_v8  ;;  %s4707_s29 = smov 88   ;;  %s4708_s0 = smov 120  }
  0x13   :  { %s5388_s5 = sld [smem:[#allocation10_spill]]  ;;  %s4709_s22 = smov 56  }
  0x14   :  { %s4710_s23 = smov 112   ;;  %s4711_s1 = smov 80  }
  0x15   :  { %4530 = vmatpush3.bf16.msra.mxu1 %v4527_v6  ;;  %s4712_s2 = smov 48   ;;  %s5375_s25 = smov 72  }
  0x16   :  { %4271 = vmatprep.subr.mxu1 %v4703_v8  ;;  %s4715_s30 = smov 40   ;;  %s5389_s4 = sld [smem:[#allocation6_spill]] }
  0x17   :  { %v73_v13 = vld [vmem:[%s5387_s26] sm:$0xff]  ;;  %v74_v14 = vld [vmem:[%s5387_s26 + $0x8] sm:$0xff]  ;;  %s5377_s26 = smov 104  }
  0x18   :  { %4269 = vmatmul.mubr.msk.f32.vlgmr.msra.gmra.mrb[0].mxu1 %vm127_vm0, %v4851_v7  ;;  %vm75_vm3 = vcmp.eq.f32.partialorder %v73_v13, 0.0  ;;  %vm76_vm4 = vcmp.eq.f32.partialorder %v74_v14, 0.0 }
  0x19   :  { %4273 = vmatprep.mubr.msk.f32.mxu1 %vm4704_vm1, %v4703_v8  ;;  %v4888_v16 = vsel %vm75_vm3, -1e+09, %v4703_v8  ;;  %v4892_v21 = vsel %vm76_vm4, -1e+09, %v4703_v8  ;;  %v89_v38 = vld [vmem:[%s5388_s5] sm:$0xff] }
  0xeb   :  { %v4861_v9 = vpop.f32.mrb[0].mxu1 }
  0xec   :  { %v4863_v10 = vpop.f32.mrb[1].mxu1 }
  0xed   :  { %210 = vrot.lane.b32.xlu0 %v4863_v10, %s4705_s24 }
  0xf1   :  { %288 = vrot.lane.b32.xlu0 %v4861_v9, %s4705_s24 }
 0x15f   :  { %v211_v11 = vpop.permute.xlu0 %210 }
 0x160   :  { %4272 = vmatpush3.xpose.msk.msra.mxu1 %vm212_vm2, %v211_v11 }
 0x161   :  { %4276 = vmatprep.subr.mxu1 %v4703_v8 }
 0x163   :  { %4274 = vmatmul.mubr.msk.f32.vlgmr.msra.gmra.mrb[2].mxu1 %vm212_vm2, %v4863_v10  ;;  %v289_v12 = vpop.permute.xlu0 %288 }
 0x164   :  { %4277 = vmatpush3.xpose.msk.msra.mxu1 %vm212_vm2, %v289_v12  ;;  %4278 = vmatprep.mubr.msk.f32.mxu1 %vm4704_vm1, %v4703_v8 }
 0x165   :  { %4286 = vmatprep.subr.mxu1 %v4703_v8 }
 0x167   :  { %4279 = vmatmul.mubr.msk.f32.vlgmr.msra.gmra.mrb[4].mxu1 %vm212_vm2, %v4861_v9 }
 0x168   :  { %4288 = vmatprep.mubr.msk.f32.mxu1 %vm4704_vm1, %v4703_v8 }
 0x236   :  { %v283_v15 = vpop.f32.mrb[2].mxu1 }
 0x237   :  { %v364_v17 = vmul.f32 0.35355338, %v283_v15  ;;  %v4275_v18 = vpop.f32.mrb[3].mxu1 }
 0x239   :  { %v366_v19 = vadd.f32 %v364_v17, %v4888_v16 }
 0x23a   :  { %v360_v20 = vpop.f32.mrb[4].mxu1 }
 0x23b   :  { %v365_v22 = vmul.f32 0.35355338, %v360_v20  ;;  %v4280_v23 = vpop.f32.mrb[5].mxu1  ;;  %v368_v24 = vsel %vm212_vm2, %v366_v19, -inf }
 0x23c   :  { %369 = vmax.xlane.f32.xlu1 %v368_v24 }
 0x23d   :  { %v367_v25 = vadd.f32 %v365_v22, %v4892_v21 }
 0x23f   :  { %v371_v26 = vsel %vm212_vm2, %v367_v25, -inf }
 0x240   :  { %372 = vmax.xlane.f32.xlu1 %v371_v26 }
 0x251   :  { %390 = vrot.lane.b32.xlu1 %v4863_v10, %s4706_s28 }
 0x2c9   :  { %v370_v27 = vpop.xlane.xlu1 %369 }
 0x2ca   :  { %v374_v28 = vsub.f32 %v366_v19, %v370_v27 }
 0x2cc   :  { %v376_v29 = vmul.f32 1.442695, %v374_v28 }
 0x2cd   :  { %v373_v30 = vpop.xlane.xlu1 %372 }
 0x2ce   :  { %4603 = vpow2.f32 %v376_v29  ;;  %v375_v31 = vsub.f32 %v367_v25, %v373_v30 }
 0x2d0   :  { %v378_v32 = vmul.f32 1.442695, %v375_v31 }
 0x2d1   :  { %v391_v33 = vpop.permute.xlu1 %390 }
 0x2d2   :  { %4605 = vpow2.f32 %v378_v32  ;;  %4282 = vmatpush3.msra.mxu0 %v391_v33 }
 0x2d3   :  { %4291 = vmatprep.subr.mxu0 %v89_v38 }
 0x2d8   :  { %v4604_v34 = vpop.eup %4603 }
 0x2d9   :  { %v380_v35 = vsel %vm212_vm2, %v4604_v34, 0.0 }
 0x2da   :  { %381 = vadd.xlane.f32.xlu0 %v380_v35 }
 0x2dc   :  { %v4606_v36 = vpop.eup %4605 }
 0x2dd   :  { %v383_v37 = vsel %vm212_vm2, %v4606_v36, 0.0 }
 0x2de   :  { %384 = vadd.xlane.f32.xlu1 %v383_v37 }
 0x2ef   :  { %466 = vrot.lane.b32.xlu1 %v4861_v9, %s4706_s28  ;;  %s4716_s28 = smov [#allocation2]  }
 0x2f0   :  { %711 = vrot.lane.b32.xlu0 %v4861_v9, %s4707_s29 }
 0x2f3   :  { %633 = vrot.lane.b32.xlu1 %v4863_v10, %s4707_s29 }
 0x2f7   :  { %631 = vrot.lane.b32.xlu1 %v4863_v10, %s4708_s0 }
 0x2fb   :  { %709 = vrot.lane.b32.xlu1 %v4861_v9, %s4708_s0 }
 0x367   :  { %v382_v39 = vpop.xlane.xlu0 %381 }
 0x368   :  { %4607 = vrcp.f32 %v382_v39 }
 0x36b   :  { %v385_v40 = vpop.xlane.xlu1 %384  ;;  %v712_v51 = vpop.permute.xlu0 %711 }
 0x36c   :  { %4609 = vrcp.f32 %v385_v40 }
 0x36f   :  { %v467_v41 = vpop.permute.xlu1 %466 }
 0x370   :  { %4287 = vmatpush3.msra.mxu1 %v467_v41 }
 0x371   :  { %4296 = vmatprep.subr.mxu1 %v4703_v8 }
 0x372   :  { %v4608_v42 = vpop.eup %4607 }
 0x373   :  { %v388_v43 = vmul.f32 %v4608_v42, %v4604_v34  ;;  %v634_v45 = vpop.permute.xlu1 %633  ;;  %v90_v42 = vld [vmem:[%s5388_s5 + $0x8] sm:$0xff] }
 0x375   :  { %4284 = vmatmul.mubr.msk.f32.vlgmr.msra.gmra.mrb[0].mxu0 %vm212_vm2, %v388_v43 }
 0x376   :  { %v4610_v44 = vpop.eup %4609  ;;  %4292 = vmatpush3.msra.mxu0 %v89_v38 }
 0x377   :  { %v389_v46 = vmul.f32 %v4610_v44, %v4606_v36  ;;  %4301 = vmatprep.subr.mxu0 %v4703_v8  ;;  %v632_v47 = vpop.permute.xlu1 %631 }
 0x379   :  { %4289 = vmatmul.mubr.msk.f32.vlgmr.msra.gmra.mrb[6].mxu1 %vm212_vm2, %v389_v46 }
 0x37a   :  { %4297 = vmatpush3.xpose.msk.msra.mxu1 %vm212_vm2, %v634_v45  ;;  %4298 = vmatprep.mubr.msk.f32.mxu1 %vm4704_vm1, %v4703_v8 }
 0x37b   :  { %4306 = vmatprep.subr.mxu1 %v4703_v8  ;;  %v710_v53 = vpop.permute.xlu1 %709 }
 0x37d   :  { %4299 = vmatmul.mubr.msk.f32.vlgmr.msra.gmra.mrb[8].mxu1 %vm212_vm2, %v632_v47 }
 0x37e   :  { %4308 = vmatprep.mubr.msk.f32.mxu1 %vm4704_vm1, %v4703_v8 }
 0x448   :  { %v462_v48 = vpop.f32.mrb[0].mxu0 }
 0x449   :  { %v4285_v49 = vpop.f32.mrb[1].mxu0  ;;  %4293 = vmatprep.mubr.msk.f32.mxu0 %vm212_vm2, %v462_v48 }
 0x44c   :  { %v538_v50 = vpop.f32.mrb[6].mxu1 }
 0x44d   :  { %v4290_v52 = vpop.f32.mrb[7].mxu1  ;;  %4294 = vmatmul.mubr.msk.f32.vlgmr.msra.gmra.mrb[2].mxu0 %vm212_vm2, %v538_v50 }
 0x44e   :  { %4302 = vmatpush3.xpose.msk.msra.mxu0 %vm212_vm2, %v712_v51  ;;  %4303 = vmatprep.mubr.msk.f32.mxu0 %vm4704_vm1, %v4703_v8 }
 0x44f   :  { %4311 = vmatprep.subr.mxu0 %v4703_v8 }
 0x450   :  { %v705_v54 = vpop.f32.mrb[8].mxu1 }
 0x451   :  { %v787_v55 = vmul.f32 0.35355338, %v705_v54  ;;  %v4300_v56 = vpop.f32.mrb[9].mxu1  ;;  %4304 = vmatmul.mubr.msk.f32.vlgmr.msra.gmra.mrb[4].mxu0 %vm212_vm2, %v710_v53 }
 0x452   :  { %4313 = vmatprep.mubr.msk.f32.mxu0 %vm4704_vm1, %v4703_v8 }
 0x453   :  { %v789_v57 = vadd.f32 %v787_v55, %v4888_v16 }
 0x455   :  { %v791_v58 = vsel %vm212_vm2, %v789_v57, -inf }
 0x456   :  { %792 = vmax.xlane.f32.xlu1 %v791_v58 }
 0x467   :  { %813 = vrot.lane.b32.xlu1 %v4863_v10, %s4709_s22 }
 0x46b   :  { %1048 = vrot.lane.b32.xlu1 %v4863_v10, %s4710_s23 }
 0x46f   :  { %1128 = vrot.lane.b32.xlu1 %v4861_v9, %s4711_s1 }
 0x473   :  { %1126 = vrot.lane.b32.xlu1 %v4861_v9, %s4710_s23 }
 0x4e3   :  { %v793_v59 = vpop.xlane.xlu1 %792 }
 0x4e4   :  { %v797_v60 = vsub.f32 %v789_v57, %v793_v59  ;;  %v91_v57 = vld [vmem:[%s5388_s5 + $0x10] sm:$0xff] }
 0x4e6   :  { %v799_v61 = vmul.f32 1.442695, %v797_v60 }
 0x4e7   :  { %v814_v62 = vpop.permute.xlu1 %813 }
 0x4e8   :  { %4611 = vpow2.f32 %v799_v61  ;;  %4307 = vmatpush3.msra.mxu1 %v814_v62 }
 0x4e9   :  { %4321 = vmatprep.subr.mxu1 %v4703_v8 }
 0x4eb   :  { %v1049_v12 = vpop.permute.xlu1 %1048 }
 0x4ef   :  { %v1129_v17 = vpop.permute.xlu1 %1128 }
 0x4f2   :  { %v4612_v63 = vpop.eup %4611 }
 0x4f3   :  { %v803_v0 = vsel %vm212_vm2, %v4612_v63, 0.0  ;;  %v1127_v18 = vpop.permute.xlu1 %1126 }
 0x4f4   :  { %804 = vadd.xlane.f32.xlu0 %v803_v0 }
 0x50a   :  { %1050 = vrot.lane.b32.xlu0 %v4863_v10, %s4711_s1 }
 0x524   :  { %v783_v1 = vpop.f32.mrb[4].mxu0 }
 0x525   :  { %v788_v2 = vmul.f32 0.35355338, %v783_v1  ;;  %v4305_v3 = vpop.f32.mrb[5].mxu0 }
 0x527   :  { %v790_v4 = vadd.f32 %v788_v2, %v4892_v21 }
 0x529   :  { %v794_v6 = vsel %vm212_vm2, %v790_v4, -inf }
 0x52a   :  { %795 = vmax.xlane.f32.xlu1 %v794_v6 }
 0x581   :  { %v805_v11 = vpop.xlane.xlu0 %804 }
 0x582   :  { %4613 = vrcp.f32 %v805_v11 }
 0x585   :  { %v1051_v15 = vpop.permute.xlu0 %1050 }
 0x58c   :  { %v4614_v13 = vpop.eup %4613 }
 0x58d   :  { %v811_v14 = vmul.f32 %v4614_v13, %v4612_v63 }
 0x58f   :  { %4309 = vmatmul.mubr.msk.f32.vlgmr.msra.gmra.mrb[10].mxu1 %vm212_vm2, %v811_v14 }
 0x590   :  { %4322 = vmatpush3.xpose.msk.msra.mxu1 %vm212_vm2, %v1051_v15  ;;  %4323 = vmatprep.mubr.msk.f32.mxu1 %vm4704_vm1, %v4703_v8 }
 0x591   :  { %4326 = vmatprep.subr.mxu1 %v4703_v8 }
 0x593   :  { %4324 = vmatmul.mubr.msk.f32.vlgmr.msra.gmra.mrb[12].mxu1 %vm212_vm2, %v1049_v12 }
 0x594   :  { %4327 = vmatpush3.xpose.msk.msra.mxu1 %vm212_vm2, %v1129_v17  ;;  %4328 = vmatprep.mubr.msk.f32.mxu1 %vm4704_vm1, %v4703_v8 }
 0x595   :  { %4336 = vmatprep.subr.mxu1 %v4703_v8 }
 0x597   :  { %4329 = vmatmul.mubr.msk.f32.vlgmr.msra.gmra.mrb[14].mxu1 %vm212_vm2, %v1127_v18 }
 0x598   :  { %4338 = vmatprep.mubr.msk.f32.mxu1 %vm4704_vm1, %v4703_v8 }
 0x5b7   :  { %v796_v19 = vpop.xlane.xlu1 %795 }
 0x5b8   :  { %v798_v20 = vsub.f32 %v790_v4, %v796_v19 }
 0x5ba   :  { %v801_v22 = vmul.f32 1.442695, %v798_v20 }
 0x5bc   :  { %4615 = vpow2.f32 %v801_v22 }
 0x5c6   :  { %v4616_v23 = vpop.eup %4615 }
 0x5c7   :  { %v806_v24 = vsel %vm212_vm2, %v4616_v23, 0.0 }
 0x5c8   :  { %807 = vadd.xlane.f32.xlu0 %v806_v24 }
 0x5de   :  { %889 = vrot.lane.b32.xlu0 %v4861_v9, %s4709_s22 }
 0x5e2   :  { %1306 = vrot.lane.b32.xlu0 %v4861_v9, %s4712_s2 }
 0x5e6   :  { %1467 = vrot.lane.b32.xlu0 %v4863_v10, %s5375_s25 }
 0x5ea   :  { %1545 = vrot.lane.b32.xlu0 %v4861_v9, %s5375_s25 }
 0x5ee   :  { %1465 = vrot.lane.b32.xlu0 %v4863_v10, %s5377_s26 }
 0x655   :  { %v808_v25 = vpop.xlane.xlu0 %807 }
 0x656   :  { %4617 = vrcp.f32 %v808_v25 }
 0x659   :  { %v890_v26 = vpop.permute.xlu0 %889 }
 0x65a   :  { %4312 = vmatpush3.msra.mxu0 %v890_v26 }
 0x65b   :  { %4316 = vmatprep.subr.mxu0 %v90_v42 }
 0x65d   :  { %v1307_v27 = vpop.permute.xlu0 %1306 }
 0x65e   :  { %4337 = vmatpush3.msra.mxu1 %v1307_v27 }
 0x65f   :  { %4346 = vmatprep.subr.mxu1 %v4703_v8 }
 0x660   :  { %v4618_v28 = vpop.eup %4617 }
 0x661   :  { %v812_v29 = vmul.f32 %v4618_v28, %v4616_v23  ;;  %v1468_v59 = vpop.permute.xlu0 %1467 }
 0x662   :  { %v885_v30 = vpop.f32.mrb[10].mxu1 }
 0x663   :  { %v4310_v31 = vpop.f32.mrb[11].mxu1  ;;  %4314 = vmatmul.mubr.msk.f32.vlgmr.msra.gmra.mrb[6].mxu0 %vm212_vm2, %v812_v29 }
 0x664   :  { %4318 = vmatprep.mubr.msk.f32.mxu0 %vm212_vm2, %v885_v30  ;;  %4317 = vmatpush3.msra.mxu0 %v90_v42 }
 0x665   :  { %4331 = vmatprep.subr.mxu0 %v4703_v8  ;;  %v1546_v63 = vpop.permute.xlu0 %1545 }
 0x666   :  { %v1122_v32 = vpop.f32.mrb[12].mxu1 }
 0x667   :  { %v1204_v33 = vmul.f32 0.35355338, %v1122_v32  ;;  %v4325_v34 = vpop.f32.mrb[13].mxu1 }
 0x669   :  { %v1206_v35 = vadd.f32 %v1204_v33, %v4888_v16  ;;  %v1466_v1 = vpop.permute.xlu0 %1465 }
 0x66a   :  { %v1200_v36 = vpop.f32.mrb[14].mxu1 }
 0x66b   :  { %v1205_v37 = vmul.f32 0.35355338, %v1200_v36  ;;  %v4330_v38 = vpop.f32.mrb[15].mxu1  ;;  %v1208_v39 = vsel %vm212_vm2, %v1206_v35, -inf }
 0x66c   :  { %1209 = vmax.xlane.f32.xlu1 %v1208_v39 }
 0x66d   :  { %v1207_v40 = vadd.f32 %v1205_v37, %v4892_v21 }
 0x66f   :  { %v1211_v41 = vsel %vm212_vm2, %v1207_v40, -inf }
 0x670   :  { %1212 = vmax.xlane.f32.xlu1 %v1211_v41 }
 0x6f9   :  { %v1210_v43 = vpop.xlane.xlu1 %1209 }
 0x6fa   :  { %v1214_v44 = vsub.f32 %v1206_v35, %v1210_v43  ;;  %v4064_v43 = vld [vmem:[%s5353_s6] ss:$0 sm:$0xff] }
 0x6fc   :  { %v1216_v45 = vmul.f32 1.442695, %v1214_v44 }
 0x6fd   :  { %v1213_v46 = vpop.xlane.xlu1 %1212 }
 0x6fe   :  { %4619 = vpow2.f32 %v1216_v45  ;;  %v1215_v47 = vsub.f32 %v1207_v40, %v1213_v46 }
 0x700   :  { %v1218_v48 = vmul.f32 1.442695, %v1215_v47 }
 0x702   :  { %4621 = vpow2.f32 %v1218_v48 }
 0x708   :  { %v4620_v49 = vpop.eup %4619 }
 0x709   :  { %v1220_v50 = vsel %vm212_vm2, %v4620_v49, 0.0 }
 0x70a   :  { %1221 = vadd.xlane.f32.xlu1 %v1220_v50 }
 0x70c   :  { %v4622_v51 = vpop.eup %4621 }
 0x70d   :  { %v1223_v52 = vsel %vm212_vm2, %v4622_v51, 0.0 }
 0x70e   :  { %1224 = vadd.xlane.f32.xlu1 %v1223_v52 }
 0x71f   :  { %1230 = vrot.lane.b32.xlu1 %v4863_v10, %s4712_s2 }
 0x723   :  { %1543 = vrot.lane.b32.xlu1 %v4861_v9, %s5377_s26 }
 0x736   :  { %v961_v53 = vpop.f32.mrb[6].mxu0 }
 0x737   :  { %v4315_v54 = vpop.f32.mrb[7].mxu0  ;;  %4319 = vmatmul.mubr.msk.f32.vlgmr.msra.gmra.mrb[2].mxu0 %vm212_vm2, %v961_v53 }
 0x738   :  { %4333 = vmatprep.mubr.msk.f32.mxu0 %vm4704_vm1, %v4703_v8 }
 0x797   :  { %v1222_v55 = vpop.xlane.xlu1 %1221 }
 0x798   :  { %4623 = vrcp.f32 %v1222_v55 }
 0x79b   :  { %v1225_v56 = vpop.xlane.xlu1 %1224 }
 0x79c   :  { %4625 = vrcp.f32 %v1225_v56  ;;  %v94_v56 = vld [vmem:[%s5354_s7] sm:$0xff] }
 0x79f   :  { %v1231_v58 = vpop.permute.xlu1 %1230 }
 0x7a0   :  { %4332 = vmatpush3.msra.mxu0 %v1231_v58  ;;  %v95_v58 = vld [vmem:[%s5354_s7 + $0x8] sm:$0xff] }
 0x7a1   :  { %4341 = vmatprep.subr.mxu0 %v91_v57 }
 0x7a2   :  { %v4624_v60 = vpop.eup %4623 }
 0x7a3   :  { %v1228_v61 = vmul.f32 %v4624_v60, %v4620_v49  ;;  %v1544_v11 = vpop.permute.xlu1 %1543  ;;  %v101_v60 = vld [vmem:[%s5355_s8 + $0x18] sm:$0xff] }
 0x7a5   :  { %4334 = vmatmul.mubr.msk.f32.vlgmr.msra.gmra.mrb[8].mxu0 %vm212_vm2, %v1228_v61  ;;  %v4531_v61 = vpack.c.bf16 %v95_v58, %v94_v56 }
 0x7a6   :  { %v4626_v62 = vpop.eup %4625  ;;  %4342 = vmatpush3.msra.mxu0 %v91_v57 }
 0x7a7   :  { %v1229_v0 = vmul.f32 %v4626_v62, %v4622_v51  ;;  %4351 = vmatprep.subr.mxu0 %v4703_v8 }
 0x7a9   :  { %4339 = vmatmul.mubr.msk.f32.vlgmr.msra.gmra.mrb[16].mxu1 %vm212_vm2, %v1229_v0  ;;  %v96_v0 = vld [vmem:[%s5354_s7 + $0x10] sm:$0xff] }
 0x7aa   :  { %4347 = vmatpush3.xpose.msk.msra.mxu1 %vm212_vm2, %v1468_v59  ;;  %4348 = vmatprep.mubr.msk.f32.mxu1 %vm4704_vm1, %v4703_v8  ;;  %v100_v59 = vld [vmem:[%s5355_s8 + $0x10] sm:$0xff] }
 0x7ab   :  { %4356 = vmatprep.subr.mxu1 %v4703_v8  ;;  %v4543_v62 = vpack.c.bf16 %v101_v60, %v100_v59  ;;  %v102_v60 = vld [vmem:[%s5356_s9] sm:$0xff] }
 0x7ad   :  { %4349 = vmatmul.mubr.msk.f32.vlgmr.msra.gmra.mrb[18].mxu1 %vm212_vm2, %v1466_v1  ;;  %v97_v1 = vld [vmem:[%s5354_s7 + $0x18] sm:$0xff] }
 0x7ae   :  { %4358 = vmatprep.mubr.msk.f32.mxu1 %vm4704_vm1, %v4703_v8 }
 0x878   :  { %v1302_v2 = vpop.f32.mrb[8].mxu0 }
 0x879   :  { %v4335_v3 = vpop.f32.mrb[9].mxu0  ;;  %4343 = vmatprep.mubr.msk.f32.mxu0 %vm212_vm2, %v1302_v2  ;;  %v4535_v2 = vpack.c.bf16 %v97_v1, %v96_v0 }
 0x87a   :  { %v72_v3 = vld [vmem:[%s5389_s4 + $0x8] sm:$0xff] }
 0x87c   :  { %v1378_v4 = vpop.f32.mrb[16].mxu1 }
 0x87d   :  { %v4340_v6 = vpop.f32.mrb[17].mxu1  ;;  %4344 = vmatmul.mubr.msk.f32.vlgmr.msra.gmra.mrb[2].mxu0 %vm212_vm2, %v1378_v4 }
 0x87e   :  { %4352 = vmatpush3.xpose.msk.msra.mxu0 %vm212_vm2, %v1546_v63  ;;  %4353 = vmatprep.mubr.msk.f32.mxu0 %vm4704_vm1, %v4703_v8  ;;  %v71_v63 = vld [vmem:[%s5389_s4] sm:$0xff]  ;;  %s4043_s4 = sshll.u32 %s4716_s28, 4  ;;  %s4044_s4 = int_to_ptr.vmem [resolvable:$true] %s4043_s4 }
 0x87f   :  { %4361 = vmatprep.subr.mxu0 %v4703_v8  ;;  %p4684_p1 = scmp.lt.s32.totalorder %s4044_s4, %s4044_s4 }
 0x880   :  { %v1539_v12 = vpop.f32.mrb[18].mxu1 }
 0x881   :  { %v1621_v13 = vmul.f32 0.35355338, %v1539_v12  ;;  %v4350_v14 = vpop.f32.mrb[19].mxu1  ;;  %4354 = vmatmul.mubr.msk.f32.vlgmr.msra.gmra.mrb[10].mxu0 %vm212_vm2, %v1544_v11 }
 0x882   :  { %4363 = vmatprep.mubr.msk.f32.mxu0 %vm4704_vm1, %v4703_v8 }
 0x883   :  { %v1623_v15 = vadd.f32 %v1621_v13, %v4888_v16 }
 0x885   :  { %v1625_v17 = vsel %vm212_vm2, %v1623_v15, -inf }
 0x886   :  { %1626 = vmax.xlane.f32.xlu0 %v1625_v17 }
 0x913   :  { %v1627_v18 = vpop.xlane.xlu0 %1626 }
 0x914   :  { %v1631_v19 = vsub.f32 %v1623_v15, %v1627_v18 }
 0x916   :  { %v1633_v20 = vmul.f32 1.442695, %v1631_v19 }
 0x918   :  { %4627 = vpow2.f32 %v1633_v20 }
 0x922   :  { %v4628_v22 = vpop.eup %4627 }
 0x923   :  { %v1637_v23 = vsel %vm212_vm2, %v4628_v22, 0.0 }
 0x924   :  { %1638 = vadd.xlane.f32.xlu0 %v1637_v23 }
 0x954   :  { %v1617_v24 = vpop.f32.mrb[10].mxu0 }
 0x955   :  { %v1622_v25 = vmul.f32 0.35355338, %v1617_v24  ;;  %v4355_v26 = vpop.f32.mrb[11].mxu0 }
 0x957   :  { %v1624_v27 = vadd.f32 %v1622_v25, %v4892_v21 }
 0x959   :  { %v1628_v28 = vsel %vm212_vm2, %v1624_v27, -inf }
 0x95a   :  { %1629 = vmax.xlane.f32.xlu1 %v1628_v28  ;;  %v4089_v28 = vld [vmem:[%s5362_s15] ss:$0 sm:$0xff] }
 0x96b   :  { %1647 = vrot.lane.b32.xlu1 %v4863_v10, %s4715_s30  ;;  %v92_v10 = vld [vmem:[%s5388_s5 + $0x18] sm:$0xff]  ;;  %s5390_s5 = sld [smem:[#allocation8_spill]] }
 0x9b1   :  { %v1639_v16 = vpop.xlane.xlu0 %1638 }
 0x9b2   :  { %4629 = vrcp.f32 %v1639_v16 }
 0x9bc   :  { %v4630_v30 = vpop.eup %4629 }
 0x9bd   :  { %v1645_v33 = vmul.f32 %v4630_v30, %v4628_v22 }
 0x9e7   :  { %v1630_v29 = vpop.xlane.xlu1 %1629 }
 0x9e8   :  { %v1632_v31 = vsub.f32 %v1624_v27, %v1630_v29 }
 0x9ea   :  { %v1635_v32 = vmul.f32 1.442695, %v1632_v31  ;;  %v4090_v31 = vld [vmem:[%s5363_s16] ss:$0 sm:$0xff] }
 0x9eb   :  { %v1648_v34 = vpop.permute.xlu1 %1647 }
 0x9ec   :  { %4631 = vpow2.f32 %v1635_v32  ;;  %4357 = vmatpush3.msra.mxu1 %v1648_v34 }
 0x9ed   :  { %4359 = vmatmul.mubr.msk.f32.vlgmr.msra.gmra.mrb[20].mxu1 %vm212_vm2, %v1645_v33  ;;  %4532 = vmatprep.subr.bf16.mxu1 %v4531_v61 }
 0x9ee   :  { %4534 = vmatpush3.bf16.msra.mxu1 %v4531_v61 }
 0x9ef   :  { %4536 = vmatprep.subr.bf16.mxu1 %v4535_v2 }
 0x9f2   :  { %4538 = vmatpush3.bf16.msra.mxu1 %v4535_v2 }
 0x9f3   :  { %4393 = vmatprep.subr.mxu1 %v4703_v8 }
 0x9f6   :  { %v4632_v35 = vpop.eup %4631 }
 0x9f7   :  { %v1640_v21 = vsel %vm212_vm2, %v4632_v35, 0.0 }
 0x9f8   :  { %1641 = vadd.xlane.f32.xlu0 %v1640_v21 }
 0xa0e   :  { %1723 = vrot.lane.b32.xlu0 %v4861_v9, %s4715_s30  ;;  %s4679_s30 = scalar_lea.vmem %s4044_s4, 256 }
 0xa0f   :  { %p4680_p0 = scmp.ne.s32.totalorder %s4044_s4, %s4679_s30  ;;  %p4685_p2 = scmp.lt.s32.totalorder %s4679_s30, %s4679_s30 }
 0xa11   :  { %p4686_p3 = por %p4685_p2, %p4684_p1 }
 0xa13   :  { %p4687_p4 = pnand %p4686_p3, %p4680_p0 }
 0xa85   :  { %v1642_v36 = vpop.xlane.xlu0 %1641 }
 0xa86   :  { %4633 = vrcp.f32 %v1642_v36 }
 0xa89   :  { %v1724_v37 = vpop.permute.xlu0 %1723 }
 0xa8a   :  { %4362 = vmatpush3.msra.mxu0 %v1724_v37 }
 0xa8b   :  { %4366 = vmatprep.subr.mxu0 %v92_v10 }
 0xa90   :  { %v4634_v38 = vpop.eup %4633 }
 0xa91   :  { %v1646_v39 = vmul.f32 %v4634_v38, %v4632_v35  ;;  %v79_v38 = vld [vmem:[%s5390_s5] sm:$0xff] }
 0xa92   :  { %vm81_vm5 = vcmp.eq.f32.partialorder %v79_v38, 0.0 }
 0xa93   :  { %4364 = vmatmul.mubr.msk.f32.vlgmr.msra.gmra.mrb[12].mxu0 %vm212_vm2, %v1646_v39  ;;  %v80_v39 = vld [vmem:[%s5390_s5 + $0x8] sm:$0xff] }
 0xa94   :  { %4367 = vmatpush3.msra.mxu0 %v92_v10  ;;  %vm82_vm6 = vcmp.eq.f32.partialorder %v80_v39, 0.0 }
 0xac0   :  { %v1719_v40 = vpop.f32.mrb[20].mxu1 }
 0xac1   :  { %v4360_v41 = vpop.f32.mrb[21].mxu1  ;;  %4368 = vmatprep.mubr.msk.f32.mxu0 %vm212_vm2, %v1719_v40 }
 0xac2   :  { %v5119_v41 = vsel %vm81_vm5, -1e+09, %v4703_v8 }
 0xb66   :  { %v1795_v42 = vpop.f32.mrb[12].mxu0 }
 0xb67   :  { %v4365_v9 = vpop.f32.mrb[13].mxu0  ;;  %4369 = vmatmul.mubr.msk.f32.vlgmr.msra.gmra.mrb[2].mxu0 %vm212_vm2, %v1795_v42 }
 0xb68   :  { %4390 = vmatprep.mubr.msk.f32.mxu0 %vm127_vm0, %v71_v63 }
 0xc3a   :  { %v4370_v44 = vpop.f32.mrb[2].mxu0 }
 0xc3b   :  { %v4571_v45 = vadd.f32 %v4370_v44, %v4064_v43  ;;  %v1871_v46 = vpop.f32.mrb[3].mxu0 }
 0xc3c   :  { %v4572_v47 = vadd.f32 %v4064_v43, %v1871_v46 }
 0xc3d   :  { %v1883_v48 = vadd.f32 %v4571_v45, %v4851_v7  ;;  %v98_v7 = vld [vmem:[%s5355_s8] sm:$0xff]  ;;  %v5123_v45 = vsel %vm82_vm6, -1e+09, %v4703_v8 }
 0xc3e   :  { %v1882_v49 = vadd.f32 %v4572_v47, %v4844_v5  ;;  %v99_v5 = vld [vmem:[%s5355_s8 + $0x8] sm:$0xff] }
 0xc3f   :  { %v1887_v50 = vsel %vm127_vm0, %v1883_v48, 0.0  ;;  %v1894_v51 = vmul.f32 %v1883_v48, %v1883_v48  ;;  %v4539_v57 = vpack.c.bf16 %v99_v5, %v98_v7 }
 0xc40   :  { %1888 = vadd.xlane.f32.xlu0 %v1887_v50  ;;  %v1884_v52 = vsel %vm127_vm0, %v1882_v49, 0.0  ;;  %v1893_v53 = vmul.f32 %v1882_v49, %v1882_v49 }
 0xc41   :  { %1885 = vadd.xlane.f32.xlu1 %v1884_v52  ;;  %v1898_v54 = vsel %vm127_vm0, %v1894_v51, 0.0  ;;  %4540 = vmatprep.subr.bf16.mxu0 %v4539_v57 }
 0xc42   :  { %v1895_v55 = vsel %vm127_vm0, %v1893_v53, 0.0  ;;  %4542 = vmatpush3.bf16.msra.mxu0 %v4539_v57 }
 0xc43   :  { %4544 = vmatprep.subr.bf16.mxu0 %v4543_v62 }
 0xc44   :  { %1899 = vadd.xlane.f32.xlu0 %v1898_v54 }
 0xc45   :  { %1896 = vadd.xlane.f32.xlu1 %v1895_v55 }
 0xc46   :  { %4546 = vmatpush3.bf16.msra.mxu0 %v4543_v62 }
 0xc47   :  { %4403 = vmatprep.subr.mxu0 %v4703_v8 }
 0xc49   :  { %4391 = vmatmul.mubr.msk.f32.vlgmr.msra.gmra.mrb[14].mxu0 %vm127_vm0, %v72_v3 }
 0xc4a   :  { %4405 = vmatprep.mubr.msk.f32.mxu0 %vm4704_vm1, %v4703_v8 }
 0xccd   :  { %v1889_v4 = vpop.xlane.xlu0 %1888 }
 0xcce   :  { %v1892_v6 = vmul.f32 0.03125, %v1889_v4  ;;  %v1886_v11 = vpop.xlane.xlu1 %1885 }
 0xccf   :  { %v1891_v12 = vmul.f32 0.03125, %v1886_v11 }
 0xcd0   :  { %v1904_v14 = vmul.f32 %v1892_v6, %v1892_v6  ;;  %v1908_v25 = vsub.f32 %v1883_v48, %v1892_v6 }
 0xcd1   :  { %v1900_v13 = vpop.xlane.xlu0 %1899  ;;  %v1903_v18 = vmul.f32 %v1891_v12, %v1891_v12  ;;  %v1907_v27 = vsub.f32 %v1882_v49, %v1891_v12 }
 0xcd2   :  { %v1902_v15 = vmul.f32 0.03125, %v1900_v13  ;;  %v1897_v17 = vpop.xlane.xlu1 %1896 }
 0xcd3   :  { %v1901_v19 = vmul.f32 0.03125, %v1897_v17 }
 0xcd4   :  { %v1906_v20 = vsub.f32 %v1902_v15, %v1904_v14 }
 0xcd5   :  { %v1905_v22 = vsub.f32 %v1901_v19, %v1903_v18 }
 0xcd6   :  { %v1910_v23 = vadd.f32 1e-05, %v1906_v20 }
 0xcd7   :  { %v1909_v24 = vadd.f32 1e-05, %v1905_v22 }
 0xcd8   :  { %4635 = vrsqrt.f32 %v1910_v23 }
 0xcd9   :  { %4637 = vrsqrt.f32 %v1909_v24 }
 0xce2   :  { %v4636_v26 = vpop.eup %4635 }
 0xce3   :  { %v4638_v16 = vpop.eup %4637  ;;  %v1914_v29 = vmul.f32 %v4636_v26, %v1908_v25 }
 0xce4   :  { %v1913_v30 = vmul.f32 %v4638_v16, %v1907_v27 }
 0xce5   :  { %v1922_v32 = vmul.f32 %v4089_v28, %v1914_v29 }
 0xce6   :  { %v1921_v33 = vmul.f32 %v4089_v28, %v1913_v30 }
 0xce7   :  { %v5082_v35 = vadd.f32 %v4090_v31, %v1922_v32 }
 0xce8   :  { %v5080_v34 = vadd.f32 %v4090_v31, %v1921_v33 }
 0xcea   :  { %4379 = vmatprep.mubr.msk.f32.mxu1 %vm127_vm0, %v5080_v34 }
 0xceb   :  { %4380 = vmatmul.mubr.msk.f32.vlgmr.msra.gmra.mrb[22].mxu1 %vm127_vm0, %v5082_v35 }
 0xcec   :  { %4395 = vmatprep.mubr.msk.f32.mxu1 %vm4704_vm1, %v4703_v8 }
 0xd1c   :  { %v5090_v21 = vpop.f32.mrb[14].mxu0 }
 0xd1d   :  { %v5092_v36 = vpop.f32.mrb[15].mxu0 }
 0xd1e   :  { %4394 = vmatpush3.xpose.msk.msra.mxu1 %vm212_vm2, %v5092_v36 }
 0xd1f   :  { %4398 = vmatprep.subr.mxu1 %v4703_v8 }
 0xdbe   :  { %v5097_v10 = vpop.f32.mrb[22].mxu1 }
 0xdbf   :  { %v5099_v37 = vpop.f32.mrb[23].mxu1 }
 0xdc0   :  { %4396 = vmatmul.mubr.msk.f32.vlgmr.msra.gmra.mrb[24].mxu1 %vm212_vm2, %v5099_v37 }
 0xdc1   :  { %4399 = vmatpush3.xpose.msk.msra.mxu1 %vm212_vm2, %v5090_v21  ;;  %4400 = vmatprep.mubr.msk.f32.mxu1 %vm4704_vm1, %v4703_v8 }
 0xdc2   :  { %4408 = vmatprep.subr.mxu1 %v4703_v8 }
 0xdc4   :  { %4401 = vmatmul.mubr.msk.f32.vlgmr.msra.gmra.mrb[26].mxu1 %vm212_vm2, %v5097_v10 }
 0xdc5   :  { %4410 = vmatprep.mubr.msk.f32.mxu1 %vm4704_vm1, %v4703_v8 }
 0xe93   :  { %v2165_v40 = vpop.f32.mrb[24].mxu1 }
 0xe94   :  { %v2245_v42 = vmul.f32 0.35355338, %v2165_v40  ;;  %v4397_v9 = vpop.f32.mrb[25].mxu1 }
 0xe96   :  { %v2247_v43 = vadd.f32 %v2245_v42, %v5119_v41 }
 0xe97   :  { %v2241_v44 = vpop.f32.mrb[26].mxu1 }
 0xe98   :  { %v2246_v46 = vmul.f32 0.35355338, %v2241_v44  ;;  %v4402_v47 = vpop.f32.mrb[27].mxu1  ;;  %v2249_v48 = vsel %vm212_vm2, %v2247_v43, -inf }
 0xe99   :  { %2250 = vmax.xlane.f32.xlu1 %v2249_v48 }
 0xe9a   :  { %v2248_v49 = vadd.f32 %v2246_v46, %v5123_v45 }
 0xe9c   :  { %v2252_v50 = vsel %vm212_vm2, %v2248_v49, -inf }
 0xe9d   :  { %2253 = vmax.xlane.f32.xlu0 %v2252_v50 }
 0xf26   :  { %v2251_v51 = vpop.xlane.xlu1 %2250 }
 0xf27   :  { %v2255_v52 = vsub.f32 %v2247_v43, %v2251_v51 }
 0xf29   :  { %v2257_v53 = vmul.f32 1.442695, %v2255_v52 }
 0xf2a   :  { %v2254_v54 = vpop.xlane.xlu0 %2253 }
 0xf2b   :  { %4639 = vpow2.f32 %v2257_v53  ;;  %v2256_v55 = vsub.f32 %v2248_v49, %v2254_v54 }
 0xf2d   :  { %v2259_v7 = vmul.f32 1.442695, %v2256_v55 }
 0xf2f   :  { %4641 = vpow2.f32 %v2259_v7 }
 0xf35   :  { %v4640_v5 = vpop.eup %4639 }
 0xf36   :  { %v2261_v56 = vsel %vm212_vm2, %v4640_v5, 0.0 }
 0xf37   :  { %2262 = vadd.xlane.f32.xlu1 %v2261_v56 }
 0xf39   :  { %v4642_v57 = vpop.eup %4641 }
 0xf3a   :  { %v2264_v58 = vsel %vm212_vm2, %v4642_v57, 0.0 }
 0xf3b   :  { %2265 = vadd.xlane.f32.xlu0 %v2264_v58 }
 0xf48   :  { %2271 = vrot.lane.b32.xlu1 %v5092_v36, %s4705_s24 }
 0xf4c   :  { %2514 = vrot.lane.b32.xlu1 %v5092_v36, %s4708_s0 }
 0xf50   :  { %2512 = vrot.lane.b32.xlu1 %v5099_v37, %s4708_s0 }
 0xf51   :  { %2347 = vrot.lane.b32.xlu0 %v5090_v21, %s4705_s24  ;;  %s5391_s24 = smov 104  }
 0xf54   :  { %2590 = vrot.lane.b32.xlu1 %v5097_v10, %s4708_s0 }
 0xf55   :  { %2592 = vrot.lane.b32.xlu0 %v5090_v21, %s4708_s0 }
 0xf58   :  { %2931 = vrot.lane.b32.xlu1 %v5092_v36, %s4710_s23 }
 0xfc4   :  { %v2263_v59 = vpop.xlane.xlu1 %2262 }
 0xfc5   :  { %4643 = vrcp.f32 %v2263_v59 }
 0xfc8   :  { %v2272_v61 = vpop.permute.xlu1 %2271  ;;  %v2266_v62 = vpop.xlane.xlu0 %2265 }
 0xfc9   :  { %4645 = vrcp.f32 %v2266_v62  ;;  %4404 = vmatpush3.msra.mxu0 %v2272_v61 }
 0xfca   :  { %4413 = vmatprep.subr.mxu0 %v102_v60 }
 0xfcc   :  { %v2348_v63 = vpop.permute.xlu0 %2347  ;;  %v2515_v3 = vpop.permute.xlu1 %2514 }
 0xfcd   :  { %4409 = vmatpush3.msra.mxu1 %v2348_v63 }
 0xfce   :  { %4418 = vmatprep.subr.mxu1 %v4703_v8 }
 0xfcf   :  { %v4644_v0 = vpop.eup %4643 }
 0xfd0   :  { %v2269_v1 = vmul.f32 %v4644_v0, %v4640_v5  ;;  %v2513_v6 = vpop.permute.xlu1 %2512  ;;  %v2593_v14 = vpop.permute.xlu0 %2592 }
 0xfd2   :  { %4406 = vmatmul.mubr.msk.f32.vlgmr.msra.gmra.mrb[16].mxu0 %vm212_vm2, %v2269_v1  ;;  %v103_v1 = vld [vmem:[%s5356_s9 + $0x8] sm:$0xff] }
 0xfd3   :  { %v4646_v2 = vpop.eup %4645  ;;  %4414 = vmatpush3.msra.mxu0 %v102_v60 }
 0xfd4   :  { %v2270_v4 = vmul.f32 %v4646_v2, %v4642_v57  ;;  %4423 = vmatprep.subr.mxu0 %v4703_v8  ;;  %v2591_v17 = vpop.permute.xlu1 %2590 }
 0xfd6   :  { %4411 = vmatmul.mubr.msk.f32.vlgmr.msra.gmra.mrb[28].mxu1 %vm212_vm2, %v2270_v4 }
 0xfd7   :  { %4419 = vmatpush3.xpose.msk.msra.mxu1 %vm212_vm2, %v2515_v3  ;;  %4420 = vmatprep.mubr.msk.f32.mxu1 %vm4704_vm1, %v4703_v8 }
 0xfd8   :  { %4428 = vmatprep.subr.mxu1 %v4703_v8  ;;  %v2932_v38 = vpop.permute.xlu1 %2931 }
 0xfda   :  { %4421 = vmatmul.mubr.msk.f32.vlgmr.msra.gmra.mrb[30].mxu1 %vm212_vm2, %v2513_v6 }
 0xfdb   :  { %4430 = vmatprep.mubr.msk.f32.mxu1 %vm4704_vm1, %v4703_v8 }
0x10a5   :  { %v2343_v11 = vpop.f32.mrb[16].mxu0 }
0x10a6   :  { %v4407_v12 = vpop.f32.mrb[17].mxu0  ;;  %4415 = vmatprep.mubr.msk.f32.mxu0 %vm212_vm2, %v2343_v11 }
0x10a9   :  { %v2419_v13 = vpop.f32.mrb[28].mxu1 }
0x10aa   :  { %v4412_v15 = vpop.f32.mrb[29].mxu1  ;;  %4416 = vmatmul.mubr.msk.f32.vlgmr.msra.gmra.mrb[18].mxu0 %vm212_vm2, %v2419_v13 }
0x10ab   :  { %4424 = vmatpush3.xpose.msk.msra.mxu0 %vm212_vm2, %v2593_v14  ;;  %4425 = vmatprep.mubr.msk.f32.mxu0 %vm4704_vm1, %v4703_v8 }
0x10ac   :  { %4433 = vmatprep.subr.mxu0 %v4703_v8 }
0x10ad   :  { %v2586_v18 = vpop.f32.mrb[30].mxu1 }
0x10ae   :  { %v2668_v19 = vmul.f32 0.35355338, %v2586_v18  ;;  %v4422_v20 = vpop.f32.mrb[31].mxu1  ;;  %4426 = vmatmul.mubr.msk.f32.vlgmr.msra.gmra.mrb[20].mxu0 %vm212_vm2, %v2591_v17 }
0x10af   :  { %4435 = vmatprep.mubr.msk.f32.mxu0 %vm4704_vm1, %v4703_v8 }
0x10b0   :  { %v2670_v22 = vadd.f32 %v2668_v19, %v5119_v41 }
0x10b2   :  { %v2672_v23 = vsel %vm212_vm2, %v2670_v22, -inf }
0x10b3   :  { %2673 = vmax.xlane.f32.xlu0 %v2672_v23  ;;  %v104_v23 = vld [vmem:[%s5356_s9 + $0x10] sm:$0xff] }
0x10c9   :  { %2694 = vrot.lane.b32.xlu0 %v5092_v36, %s4707_s29 }
0x10cd   :  { %2929 = vrot.lane.b32.xlu0 %v5099_v37, %s4710_s23 }
0x10d1   :  { %3007 = vrot.lane.b32.xlu0 %v5097_v10, %s4710_s23 }
0x1140   :  { %v2674_v24 = vpop.xlane.xlu0 %2673 }
0x1141   :  { %v2678_v25 = vsub.f32 %v2670_v22, %v2674_v24 }
0x1143   :  { %v2680_v26 = vmul.f32 1.442695, %v2678_v25 }
0x1144   :  { %v2695_v27 = vpop.permute.xlu0 %2694 }
0x1145   :  { %4647 = vpow2.f32 %v2680_v26  ;;  %4429 = vmatpush3.msra.mxu1 %v2695_v27 }
0x1146   :  { %4443 = vmatprep.subr.mxu1 %v4703_v8 }
0x1148   :  { %v2930_v9 = vpop.permute.xlu0 %2929 }
0x114c   :  { %v3008_v44 = vpop.permute.xlu0 %3007 }
0x114f   :  { %v4648_v28 = vpop.eup %4647 }
0x1150   :  { %v2684_v16 = vsel %vm212_vm2, %v4648_v28, 0.0 }
0x1151   :  { %2685 = vadd.xlane.f32.xlu1 %v2684_v16 }
0x1162   :  { %3009 = vrot.lane.b32.xlu1 %v5090_v21, %s4710_s23 }
0x1181   :  { %v2664_v29 = vpop.f32.mrb[20].mxu0 }
0x1182   :  { %v2669_v30 = vmul.f32 0.35355338, %v2664_v29  ;;  %v4427_v31 = vpop.f32.mrb[21].mxu0 }
0x1184   :  { %v2671_v32 = vadd.f32 %v2669_v30, %v5123_v45 }
0x1186   :  { %v2675_v33 = vsel %vm212_vm2, %v2671_v32, -inf }
0x1187   :  { %2676 = vmax.xlane.f32.xlu1 %v2675_v33 }
0x11de   :  { %v2686_v39 = vpop.xlane.xlu1 %2685 }
0x11df   :  { %4649 = vrcp.f32 %v2686_v39 }
0x11e2   :  { %v3010_v43 = vpop.permute.xlu1 %3009 }
0x11e9   :  { %v4650_v40 = vpop.eup %4649 }
0x11ea   :  { %v2692_v42 = vmul.f32 %v4650_v40, %v4648_v28 }
0x11ec   :  { %4431 = vmatmul.mubr.msk.f32.vlgmr.msra.gmra.mrb[32].mxu1 %vm212_vm2, %v2692_v42 }
0x11ed   :  { %4444 = vmatpush3.xpose.msk.msra.mxu1 %vm212_vm2, %v2932_v38  ;;  %4445 = vmatprep.mubr.msk.f32.mxu1 %vm4704_vm1, %v4703_v8 }
0x11ee   :  { %4448 = vmatprep.subr.mxu1 %v4703_v8 }
0x11f0   :  { %4446 = vmatmul.mubr.msk.f32.vlgmr.msra.gmra.mrb[34].mxu1 %vm212_vm2, %v2930_v9 }
0x11f1   :  { %4449 = vmatpush3.xpose.msk.msra.mxu1 %vm212_vm2, %v3010_v43  ;;  %4450 = vmatprep.mubr.msk.f32.mxu1 %vm4704_vm1, %v4703_v8 }
0x11f2   :  { %4458 = vmatprep.subr.mxu1 %v4703_v8 }
0x11f4   :  { %4451 = vmatmul.mubr.msk.f32.vlgmr.msra.gmra.mrb[36].mxu1 %vm212_vm2, %v3008_v44 }
0x11f5   :  { %4460 = vmatprep.mubr.msk.f32.mxu1 %vm4704_vm1, %v4703_v8 }
0x1214   :  { %v2677_v46 = vpop.xlane.xlu1 %2676 }
0x1215   :  { %v2679_v47 = vsub.f32 %v2671_v32, %v2677_v46 }
0x1217   :  { %v2682_v48 = vmul.f32 1.442695, %v2679_v47 }
0x1219   :  { %4651 = vpow2.f32 %v2682_v48 }
0x1223   :  { %v4652_v49 = vpop.eup %4651 }
0x1224   :  { %v2687_v50 = vsel %vm212_vm2, %v4652_v49, 0.0 }
0x1225   :  { %2688 = vadd.xlane.f32.xlu0 %v2687_v50 }
0x123b   :  { %2770 = vrot.lane.b32.xlu0 %v5090_v21, %s4707_s29 }
0x123f   :  { %3187 = vrot.lane.b32.xlu0 %v5090_v21, %s4711_s1 }
0x1243   :  { %3348 = vrot.lane.b32.xlu0 %v5092_v36, %s5391_s24 }
0x1247   :  { %3426 = vrot.lane.b32.xlu0 %v5090_v21, %s5391_s24 }
0x124b   :  { %3346 = vrot.lane.b32.xlu0 %v5099_v37, %s5391_s24 }
0x12b2   :  { %v2689_v51 = vpop.xlane.xlu0 %2688 }
0x12b3   :  { %4653 = vrcp.f32 %v2689_v51 }
0x12b6   :  { %v2771_v52 = vpop.permute.xlu0 %2770 }
0x12b7   :  { %4434 = vmatpush3.msra.mxu0 %v2771_v52 }
0x12b8   :  { %4438 = vmatprep.subr.mxu0 %v103_v1 }
0x12ba   :  { %v3188_v53 = vpop.permute.xlu0 %3187 }
0x12bb   :  { %4459 = vmatpush3.msra.mxu1 %v3188_v53 }
0x12bc   :  { %4468 = vmatprep.subr.mxu1 %v4703_v8 }
0x12bd   :  { %v4654_v54 = vpop.eup %4653 }
0x12be   :  { %v2693_v55 = vmul.f32 %v4654_v54, %v4652_v49  ;;  %v3349_v25 = vpop.permute.xlu0 %3348 }
0x12bf   :  { %v2766_v7 = vpop.f32.mrb[32].mxu1 }
0x12c0   :  { %v4432_v5 = vpop.f32.mrb[33].mxu1  ;;  %4436 = vmatmul.mubr.msk.f32.vlgmr.msra.gmra.mrb[22].mxu0 %vm212_vm2, %v2693_v55 }
0x12c1   :  { %4440 = vmatprep.mubr.msk.f32.mxu0 %vm212_vm2, %v2766_v7  ;;  %4439 = vmatpush3.msra.mxu0 %v103_v1  ;;  %v4103_v1 = vld [vmem:[%s5357_s10] ss:$0 sm:$0xff] }
0x12c2   :  { %4453 = vmatprep.subr.mxu0 %v4703_v8  ;;  %v3427_v28 = vpop.permute.xlu0 %3426 }
0x12c3   :  { %v3003_v56 = vpop.f32.mrb[34].mxu1 }
0x12c4   :  { %v3085_v57 = vmul.f32 0.35355338, %v3003_v56  ;;  %v4447_v58 = vpop.f32.mrb[35].mxu1 }
0x12c6   :  { %v3087_v37 = vadd.f32 %v3085_v57, %v5119_v41  ;;  %v3347_v29 = vpop.permute.xlu0 %3346 }
0x12c7   :  { %v3081_v59 = vpop.f32.mrb[36].mxu1 }
0x12c8   :  { %v3086_v60 = vmul.f32 0.35355338, %v3081_v59  ;;  %v4452_v61 = vpop.f32.mrb[37].mxu1  ;;  %v3089_v62 = vsel %vm212_vm2, %v3087_v37, -inf }
0x12c9   :  { %3090 = vmax.xlane.f32.xlu1 %v3089_v62 }
0x12ca   :  { %v3088_v63 = vadd.f32 %v3086_v60, %v5123_v45 }
0x12cc   :  { %v3092_v0 = vsel %vm212_vm2, %v3088_v63, -inf }
0x12cd   :  { %3093 = vmax.xlane.f32.xlu1 %v3092_v0 }
0x1356   :  { %v3091_v2 = vpop.xlane.xlu1 %3090 }
0x1357   :  { %v3095_v3 = vsub.f32 %v3087_v37, %v3091_v2  ;;  %v105_v37 = vld [vmem:[%s5356_s9 + $0x18] sm:$0xff] }
0x1359   :  { %v3097_v4 = vmul.f32 1.442695, %v3095_v3 }
0x135a   :  { %v3094_v6 = vpop.xlane.xlu1 %3093 }
0x135b   :  { %4655 = vpow2.f32 %v3097_v4  ;;  %v3096_v11 = vsub.f32 %v3088_v63, %v3094_v6 }
0x135d   :  { %v3099_v12 = vmul.f32 1.442695, %v3096_v11 }
0x135f   :  { %4657 = vpow2.f32 %v3099_v12 }
0x1365   :  { %v4656_v13 = vpop.eup %4655 }
0x1366   :  { %v3101_v14 = vsel %vm212_vm2, %v4656_v13, 0.0 }
0x1367   :  { %3102 = vadd.xlane.f32.xlu1 %v3101_v14 }
0x1369   :  { %v4658_v15 = vpop.eup %4657 }
0x136a   :  { %v3104_v17 = vsel %vm212_vm2, %v4658_v15, 0.0 }
0x136b   :  { %3105 = vadd.xlane.f32.xlu1 %v3104_v17 }
0x137c   :  { %3111 = vrot.lane.b32.xlu1 %v5092_v36, %s4711_s1  ;;  %s5392_s1 = smov 72  }
0x1380   :  { %3424 = vrot.lane.b32.xlu1 %v5097_v10, %s5391_s24 }
0x1393   :  { %v2842_v18 = vpop.f32.mrb[22].mxu0 }
0x1394   :  { %v4437_v19 = vpop.f32.mrb[23].mxu0  ;;  %4441 = vmatmul.mubr.msk.f32.vlgmr.msra.gmra.mrb[18].mxu0 %vm212_vm2, %v2842_v18 }
0x1395   :  { %4455 = vmatprep.mubr.msk.f32.mxu0 %vm4704_vm1, %v4703_v8 }
0x13f4   :  { %v3103_v20 = vpop.xlane.xlu1 %3102 }
0x13f5   :  { %4659 = vrcp.f32 %v3103_v20  ;;  %v109_v20 = vld [vmem:[%s5358_s11 + $0x10] sm:$0xff] }
0x13f8   :  { %v3106_v22 = vpop.xlane.xlu1 %3105 }
0x13f9   :  { %4661 = vrcp.f32 %v3106_v22 }
0x13fc   :  { %v3112_v24 = vpop.permute.xlu1 %3111 }
0x13fd   :  { %4454 = vmatpush3.msra.mxu0 %v3112_v24 }
0x13fe   :  { %4463 = vmatprep.subr.mxu0 %v104_v23 }
0x13ff   :  { %v4660_v10 = vpop.eup %4659 }
0x1400   :  { %v3109_v26 = vmul.f32 %v4660_v10, %v4656_v13  ;;  %v3425_v38 = vpop.permute.xlu1 %3424  ;;  %v113_v10 = vld [vmem:[%s5360_s13 + $0x8] sm:$0xff] }
0x1402   :  { %4456 = vmatmul.mubr.msk.f32.vlgmr.msra.gmra.mrb[24].mxu0 %vm212_vm2, %v3109_v26  ;;  %v114_v26 = vld [vmem:[%s5360_s13 + $0x10] sm:$0xff] }
0x1403   :  { %v4662_v27 = vpop.eup %4661  ;;  %4464 = vmatpush3.msra.mxu0 %v104_v23  ;;  %v110_v23 = vld [vmem:[%s5358_s11 + $0x18] sm:$0xff] }
0x1404   :  { %v3110_v16 = vmul.f32 %v4662_v27, %v4658_v15  ;;  %4473 = vmatprep.subr.mxu0 %v4703_v8  ;;  %v4551_v24 = vpack.c.bf16 %v110_v23, %v109_v20 }
0x1406   :  { %4461 = vmatmul.mubr.msk.f32.vlgmr.msra.gmra.mrb[38].mxu1 %vm212_vm2, %v3110_v16 }
0x1407   :  { %4469 = vmatpush3.xpose.msk.msra.mxu1 %vm212_vm2, %v3349_v25  ;;  %4470 = vmatprep.mubr.msk.f32.mxu1 %vm4704_vm1, %v4703_v8  ;;  %v112_v25 = vld [vmem:[%s5360_s13] sm:$0xff] }
0x1408   :  { %4478 = vmatprep.subr.mxu1 %v4703_v8  ;;  %v4555_v27 = vpack.c.bf16 %v113_v10, %v112_v25 }
0x140a   :  { %4471 = vmatmul.mubr.msk.f32.vlgmr.msra.gmra.mrb[40].mxu1 %vm212_vm2, %v3347_v29  ;;  %v116_v29 = vld [vmem:[%s5360_s13 + $0x20] sm:$0xff] }
0x140b   :  { %4480 = vmatprep.mubr.msk.f32.mxu1 %vm4704_vm1, %v4703_v8 }
0x14d5   :  { %v3183_v30 = vpop.f32.mrb[24].mxu0 }
0x14d6   :  { %v4457_v31 = vpop.f32.mrb[25].mxu0  ;;  %4465 = vmatprep.mubr.msk.f32.mxu0 %vm212_vm2, %v3183_v30  ;;  %v117_v30 = vld [vmem:[%s5360_s13 + $0x28] sm:$0xff] }
0x14d7   :  { %v4563_v31 = vpack.c.bf16 %v117_v30, %v116_v29 }
0x14d9   :  { %v3259_v32 = vpop.f32.mrb[38].mxu1 }
0x14da   :  { %v4462_v33 = vpop.f32.mrb[39].mxu1  ;;  %4466 = vmatmul.mubr.msk.f32.vlgmr.msra.gmra.mrb[18].mxu0 %vm212_vm2, %v3259_v32 }
0x14db   :  { %4474 = vmatpush3.xpose.msk.msra.mxu0 %vm212_vm2, %v3427_v28  ;;  %4475 = vmatprep.mubr.msk.f32.mxu0 %vm4704_vm1, %v4703_v8  ;;  %v115_v28 = vld [vmem:[%s5360_s13 + $0x18] sm:$0xff] }
0x14dc   :  { %4483 = vmatprep.subr.mxu0 %v4703_v8  ;;  %v4559_v16 = vpack.c.bf16 %v115_v28, %v114_v26 }
0x14dd   :  { %v3420_v39 = vpop.f32.mrb[40].mxu1 }
0x14de   :  { %v3502_v40 = vmul.f32 0.35355338, %v3420_v39  ;;  %v4472_v42 = vpop.f32.mrb[41].mxu1  ;;  %4476 = vmatmul.mubr.msk.f32.vlgmr.msra.gmra.mrb[26].mxu0 %vm212_vm2, %v3425_v38 }
0x14df   :  { %4485 = vmatprep.mubr.msk.f32.mxu0 %vm4704_vm1, %v4703_v8 }
0x14e0   :  { %v3504_v9 = vadd.f32 %v3502_v40, %v5119_v41 }
0x14e2   :  { %v3506_v43 = vsel %vm212_vm2, %v3504_v9, -inf }
0x14e3   :  { %3507 = vmax.xlane.f32.xlu0 %v3506_v43 }
0x1570   :  { %v3508_v44 = vpop.xlane.xlu0 %3507 }
0x1571   :  { %v3512_v46 = vsub.f32 %v3504_v9, %v3508_v44 }
0x1573   :  { %v3514_v47 = vmul.f32 1.442695, %v3512_v46 }
0x1575   :  { %4663 = vpow2.f32 %v3514_v47 }
0x157f   :  { %v4664_v48 = vpop.eup %4663 }
0x1580   :  { %v3518_v49 = vsel %vm212_vm2, %v4664_v48, 0.0 }
0x1581   :  { %3519 = vadd.xlane.f32.xlu0 %v3518_v49 }
0x15b1   :  { %v3498_v50 = vpop.f32.mrb[26].mxu0 }
0x15b2   :  { %v3503_v51 = vmul.f32 0.35355338, %v3498_v50  ;;  %v4477_v52 = vpop.f32.mrb[27].mxu0 }
0x15b4   :  { %v3505_v53 = vadd.f32 %v3503_v51, %v5123_v45 }
0x15b6   :  { %v3509_v8 = vsel %vm212_vm2, %v3505_v53, -inf }
0x15b7   :  { %3510 = vmax.xlane.f32.xlu1 %v3509_v8  ;;  %v4128_v8 = vld [vmem:[%s5364_s17] ss:$0 sm:$0xff] }
0x15c8   :  { %3528 = vrot.lane.b32.xlu1 %v5092_v36, %s5392_s1 }
0x160e   :  { %v3520_v41 = vpop.xlane.xlu0 %3519 }
0x160f   :  { %4665 = vrcp.f32 %v3520_v41 }
0x1619   :  { %v4666_v55 = vpop.eup %4665 }
0x161a   :  { %v3526_v56 = vmul.f32 %v4666_v55, %v4664_v48 }
0x1644   :  { %v3511_v54 = vpop.xlane.xlu1 %3510 }
0x1645   :  { %v3513_v7 = vsub.f32 %v3505_v53, %v3511_v54 }
0x1647   :  { %v3516_v5 = vmul.f32 1.442695, %v3513_v7  ;;  %v4129_v7 = vld [vmem:[%s5365_s18] ss:$0 sm:$0xff] }
0x1648   :  { %v3529_v57 = vpop.permute.xlu1 %3528 }
0x1649   :  { %4667 = vpow2.f32 %v3516_v5  ;;  %4479 = vmatpush3.msra.mxu1 %v3529_v57 }
0x164a   :  { %4481 = vmatmul.mubr.msk.f32.vlgmr.msra.gmra.mrb[42].mxu1 %vm212_vm2, %v3526_v56 }
0x1653   :  { %v4668_v58 = vpop.eup %4667 }
0x1654   :  { %v3521_v45 = vsel %vm212_vm2, %v4668_v58, 0.0 }
0x1655   :  { %3522 = vadd.xlane.f32.xlu0 %v3521_v45  ;;  %v118_v45 = vld [vmem:[%s5360_s13 + $0x30] sm:$0xff] }
0x166b   :  { %3604 = vrot.lane.b32.xlu0 %v5090_v21, %s5392_s1 }
0x16e2   :  { %v3523_v36 = vpop.xlane.xlu0 %3522 }
0x16e3   :  { %4669 = vrcp.f32 %v3523_v36  ;;  %v119_v36 = vld [vmem:[%s5360_s13 + $0x38] sm:$0xff] }
0x16e6   :  { %v3605_v59 = vpop.permute.xlu0 %3604 }
0x16e7   :  { %4484 = vmatpush3.msra.mxu0 %v3605_v59  ;;  %v4130_v59 = vld [vmem:[%s5359_s12] ss:$0 sm:$0xff] }
0x16e8   :  { %4488 = vmatprep.subr.mxu0 %v105_v37 }
0x16ed   :  { %v4670_v60 = vpop.eup %4669 }
0x16ee   :  { %v3527_v61 = vmul.f32 %v4670_v60, %v4668_v58 }
0x16f0   :  { %4486 = vmatmul.mubr.msk.f32.vlgmr.msra.gmra.mrb[28].mxu0 %vm212_vm2, %v3527_v61 }
0x16f1   :  { %4489 = vmatpush3.msra.mxu0 %v105_v37  ;;  %v4567_v37 = vpack.c.bf16 %v119_v36, %v118_v45 }
0x16f2   :  { %4556 = vmatprep.subr.bf16.mxu0 %v4555_v27 }
0x171d   :  { %v3600_v62 = vpop.f32.mrb[42].mxu1 }
0x171e   :  { %v4482_v63 = vpop.f32.mrb[43].mxu1  ;;  %4490 = vmatprep.mubr.msk.f32.mxu0 %vm212_vm2, %v3600_v62 }
0x17c3   :  { %v3676_v0 = vpop.f32.mrb[28].mxu0 }
0x17c4   :  { %v4487_v21 = vpop.f32.mrb[29].mxu0  ;;  %4491 = vmatmul.mubr.msk.f32.vlgmr.msra.gmra.mrb[18].mxu0 %vm212_vm2, %v3676_v0 }
0x17c5   :  { %4558 = vmatpush3.bf16.msra.mxu0 %v4555_v27 }
0x17c6   :  { %4560 = vmatprep.subr.bf16.mxu0 %v4559_v16 }
0x17c9   :  { %4562 = vmatpush3.bf16.msra.mxu0 %v4559_v16 }
0x17ca   :  { %4564 = vmatprep.subr.bf16.mxu0 %v4563_v31 }
0x17cd   :  { %4566 = vmatpush3.bf16.msra.mxu0 %v4563_v31 }
0x17ce   :  { %4568 = vmatprep.subr.bf16.mxu0 %v4567_v37 }
0x17d1   :  { %4570 = vmatpush3.bf16.msra.mxu0 %v4567_v37 }
0x1897   :  { %v4492_v2 = vpop.f32.mrb[18].mxu0 }
0x1898   :  { %v4573_v3 = vadd.f32 %v4492_v2, %v4103_v1  ;;  %v3752_v4 = vpop.f32.mrb[19].mxu0 }
0x1899   :  { %v4574_v6 = vadd.f32 %v4103_v1, %v3752_v4  ;;  %v4133_v1 = vld [vmem:[%s5361_s14] ss:$0 sm:$0xff] }
0x189a   :  { %v3764_v11 = vadd.f32 %v4573_v3, %v5082_v35  ;;  %v107_v35 = vld [vmem:[%s5358_s11] sm:$0xff] }
0x189b   :  { %v3763_v12 = vadd.f32 %v4574_v6, %v5080_v34  ;;  %v108_v34 = vld [vmem:[%s5358_s11 + $0x8] sm:$0xff] }
0x189c   :  { %v3768_v13 = vsel %vm127_vm0, %v3764_v11, 0.0  ;;  %v3774_v14 = vmul.f32 %v3764_v11, %v3764_v11  ;;  %v4547_v22 = vpack.c.bf16 %v108_v34, %v107_v35 }
0x189d   :  { %3769 = vadd.xlane.f32.xlu0 %v3768_v13  ;;  %v3765_v15 = vsel %vm127_vm0, %v3763_v12, 0.0  ;;  %v3773_v17 = vmul.f32 %v3763_v12, %v3763_v12 }
0x189e   :  { %3766 = vadd.xlane.f32.xlu1 %v3765_v15  ;;  %v3778_v18 = vsel %vm127_vm0, %v3774_v14, 0.0  ;;  %4548 = vmatprep.subr.bf16.mxu1 %v4547_v22 }
0x189f   :  { %v3775_v19 = vsel %vm127_vm0, %v3773_v17, 0.0  ;;  %4550 = vmatpush3.bf16.msra.mxu1 %v4547_v22 }
0x18a0   :  { %4552 = vmatprep.subr.bf16.mxu1 %v4551_v24 }
0x18a1   :  { %3779 = vadd.xlane.f32.xlu0 %v3778_v18 }
0x18a2   :  { %3776 = vadd.xlane.f32.xlu1 %v3775_v19 }
0x18a3   :  { %4554 = vmatpush3.bf16.msra.mxu1 %v4551_v24 }
0x192a   :  { %v3770_v32 = vpop.xlane.xlu0 %3769 }
0x192b   :  { %v3772_v33 = vmul.f32 0.03125, %v3770_v32  ;;  %v3767_v38 = vpop.xlane.xlu1 %3766 }
0x192c   :  { %v3771_v39 = vmul.f32 0.03125, %v3767_v38  ;;  %v4136_v38 = vld [vmem:[%s5366_s19] ss:$0 sm:$0xff] }
0x192d   :  { %v3784_v42 = vmul.f32 %v3772_v33, %v3772_v33  ;;  %v3788_v51 = vsub.f32 %v3764_v11, %v3772_v33 }
0x192e   :  { %v3780_v40 = vpop.xlane.xlu0 %3779  ;;  %v3783_v44 = vmul.f32 %v3771_v39, %v3771_v39  ;;  %v3787_v53 = vsub.f32 %v3763_v12, %v3771_v39 }
0x192f   :  { %v3782_v9 = vmul.f32 0.03125, %v3780_v40  ;;  %v3777_v43 = vpop.xlane.xlu1 %3776 }
0x1930   :  { %v3781_v46 = vmul.f32 0.03125, %v3777_v43 }
0x1931   :  { %v3786_v47 = vsub.f32 %v3782_v9, %v3784_v42  ;;  %v4137_v9 = vld [vmem:[%s5367_s20] ss:$0 sm:$0xff] }
0x1932   :  { %v3785_v48 = vsub.f32 %v3781_v46, %v3783_v44 }
0x1933   :  { %v3790_v49 = vadd.f32 1e-05, %v3786_v47 }
0x1934   :  { %v3789_v50 = vadd.f32 1e-05, %v3785_v48 }
0x1935   :  { %4671 = vrsqrt.f32 %v3790_v49 }
0x1936   :  { %4673 = vrsqrt.f32 %v3789_v50 }
0x193f   :  { %v4672_v52 = vpop.eup %4671 }
0x1940   :  { %v4674_v41 = vpop.eup %4673  ;;  %v3794_v54 = vmul.f32 %v4672_v52, %v3788_v51 }
0x1941   :  { %v3793_v55 = vmul.f32 %v4674_v41, %v3787_v53 }
0x1942   :  { %v3802_v5 = vmul.f32 %v4128_v8, %v3794_v54 }
0x1943   :  { %v3801_v56 = vmul.f32 %v4128_v8, %v3793_v55 }
0x1944   :  { %v3810_v58 = vadd.f32 %v4129_v7, %v3802_v5 }
0x1945   :  { %v3809_v57 = vadd.f32 %v4129_v7, %v3801_v56 }
0x1947   :  { %4501 = vmatprep.mubr.msk.f32.mxu1 %vm127_vm0, %v3809_v57 }
0x1948   :  { %4502 = vmatmul.mubr.msk.f32.vlgmr.msra.gmra.mrb[44].mxu1 %vm127_vm0, %v3810_v58 }
0x1a1b   :  { %v4503_v60 = vpop.f32.mrb[44].mxu1 }
0x1a1c   :  { %v3895_v61 = vadd.f32 %v4503_v60, %v4130_v59  ;;  %v3889_v62 = vpop.f32.mrb[45].mxu1 }
0x1a1d   :  { %v3890_v63 = vadd.f32 %v4130_v59, %v3889_v62 }
0x1a1e   :  { %v3899_v21 = vmax.f32 %v3895_v61, 0.0 }
0x1a1f   :  { %v3898_v0 = vmax.f32 %v3890_v63, 0.0 }
0x1a21   :  { %4520 = vmatprep.mubr.msk.f32.mxu0 %vm3906_vm7, %v3898_v0 }
0x1a22   :  { %4521 = vmatmul.mubr.msk.f32.vlgmr.msra.gmra.mrb[30].mxu0 %vm3906_vm7, %v3899_v21 }
0x1af5   :  { %v4522_v2 = vpop.f32.mrb[30].mxu0 }
0x1af6   :  { %v3985_v3 = vadd.f32 %v4522_v2, %v4133_v1  ;;  %v3979_v4 = vpop.f32.mrb[31].mxu0 }
0x1af7   :  { %v3980_v6 = vadd.f32 %v4133_v1, %v3979_v4 }
0x1af8   :  { %v3989_v11 = vadd.f32 %v3985_v3, %v3810_v58 }
0x1af9   :  { %v3988_v12 = vadd.f32 %v3980_v6, %v3809_v57 }
0x1afa   :  { %v3993_v13 = vsel %vm127_vm0, %v3989_v11, 0.0  ;;  %v3999_v14 = vmul.f32 %v3989_v11, %v3989_v11 }
0x1afb   :  { %3994 = vadd.xlane.f32.xlu0 %v3993_v13  ;;  %v3990_v15 = vsel %vm127_vm0, %v3988_v12, 0.0  ;;  %v3998_v17 = vmul.f32 %v3988_v12, %v3988_v12 }
0x1afc   :  { %3991 = vadd.xlane.f32.xlu1 %v3990_v15  ;;  %v4003_v18 = vsel %vm127_vm0, %v3999_v14, 0.0 }
0x1afd   :  { %v4000_v19 = vsel %vm127_vm0, %v3998_v17, 0.0 }
0x1aff   :  { %4004 = vadd.xlane.f32.xlu0 %v4003_v18 }
0x1b00   :  { %4001 = vadd.xlane.f32.xlu1 %v4000_v19 }
0x1b88   :  { %v3995_v35 = vpop.xlane.xlu0 %3994 }
0x1b89   :  { %v3997_v34 = vmul.f32 0.03125, %v3995_v35  ;;  %v3992_v20 = vpop.xlane.xlu1 %3991 }
0x1b8a   :  { %v3996_v22 = vmul.f32 0.03125, %v3992_v20 }
0x1b8b   :  { %v4009_v24 = vmul.f32 %v3997_v34, %v3997_v34  ;;  %v4013_v31 = vsub.f32 %v3989_v11, %v3997_v34 }
0x1b8c   :  { %v4005_v23 = vpop.xlane.xlu0 %4004  ;;  %v4008_v26 = vmul.f32 %v3996_v22, %v3996_v22  ;;  %v4012_v33 = vsub.f32 %v3988_v12, %v3996_v22 }
0x1b8d   :  { %v4007_v25 = vmul.f32 0.03125, %v4005_v23  ;;  %v4002_v10 = vpop.xlane.xlu1 %4001 }
0x1b8e   :  { %v4006_v27 = vmul.f32 0.03125, %v4002_v10 }
0x1b8f   :  { %v4011_v28 = vsub.f32 %v4007_v25, %v4009_v24 }
0x1b90   :  { %v4010_v16 = vsub.f32 %v4006_v27, %v4008_v26 }
0x1b91   :  { %v4015_v29 = vadd.f32 1e-05, %v4011_v28 }
0x1b92   :  { %v4014_v30 = vadd.f32 1e-05, %v4010_v16 }
0x1b93   :  { %4675 = vrsqrt.f32 %v4015_v29 }
0x1b94   :  { %4677 = vrsqrt.f32 %v4014_v30 }
0x1b9d   :  { %v4676_v32 = vpop.eup %4675 }
0x1b9e   :  { %v4678_v39 = vpop.eup %4677  ;;  %v4019_v40 = vmul.f32 %v4676_v32, %v4013_v31 }
0x1b9f   :  { %v4018_v42 = vmul.f32 %v4678_v39, %v4012_v33 }
0x1ba0   :  { %v4027_v43 = vmul.f32 %v4136_v38, %v4019_v40 }
0x1ba1   :  { %v4026_v44 = vmul.f32 %v4136_v38, %v4018_v42 }
0x1ba2   :  { %v4035_v46 = vadd.f32 %v4137_v9, %v4027_v43 }
0x1ba3   :  { %v4034_v47 = vadd.f32 %v4137_v9, %v4026_v44 }
0x1ba4   :  { %4037 = vst.msk [vmem:[#allocation2 + $0x8] sm:$0xff] %vm127_vm0, %v4035_v46 }
0x1ba5   :  { %4036 = vst.msk [vmem:[#allocation2] sm:$0xff] %vm127_vm0, %v4034_v47 }
0x1ba6   :  { %4690 = shalt.err (!%p4687_p4)
}
0x1ba7   :  { %s4691_s22 = scalar_lea.hbm %s5368_s21, 256 }
0x1ba8   :  { %p4692_p5 = scmp.ne.s32.totalorder %s5368_s21, %s4691_s22  ;;  %p4695_p6 = scmp.lt.u32.totalorder %s4691_s22, %s5368_s21 }
0x1baa   :  { %p4697_p7 = pnand %p4695_p6, %p4692_p5 }
0x1bac   :  { %4700 = shalt.err (!%p4697_p7)
}
0x1bad   :  { %s4717_s23 = smov 128   ;;  %s4718_s2 = smov 8  }
0x1bae   :  { %4049 = dma.vmem_to_hbm [thread:$0]  %s4044_s4, 256, %s5368_s21, [#allocation3], %s4717_s23, %s4717_s23, %s4718_s2  }
0x1baf   :  { %4701 = dma.done.wait [#allocation3], 256  }
0x1bb0   :  { %4702 = vsyncadd [#allocation3], 4294967040 }
0x1bb1   :  { %4053 = vsyncpa [#allocation3], 1 }

</bundles_post_ra>
